<compile_context>
chip_gen: v6e
topology: v6e:2x2x1
jax: 0.10.0
libtpu: 0.0.40
codegen_flags: <defaults>
</compile_context>

<pallas_src>
import functools

import jax
import jax.numpy as jnp
from jax.experimental import pallas as pl
from jax.experimental.pallas import tpu as pltpu

LANE = 128       # TPU lane width; padded feature dims use this
FC3_DIM = 128    # trunk output width (fixed by the PyTorch module)


def _round_up(n, m):
    return -(-n // m) * m


def net_kernel(x_ref,
               w1_ref, b1_ref,
               w2_ref, b2_ref,
               w3_ref, b3_ref,
               wh_ref, bh_ref,
               wt_ref, bt_ref,
               wvo_ref, bvo_ref,
               out_ref,
               *, action_dim):
    """One batch tile of the Net forward pass.

    x_ref   : (TB, state_dim) f32 input tile (no lane padding, no wrapper cast)
    w1      : (state_dim, 128) f32;   w2/w3: (128,128) bf16;   b*: (1,128) f32
    wh/bh   : fused [policy_1 | value_1] hidden layer, (128, 256) bf16 / (1,256) f32
    wt/bt   : policy output layer only, (128, 128) bf16 / (1,128) f32 (cols >= A zero)
    wvo/bvo : value output as a (1,128) f32 row + (1,1) f32 bias (VPU/XLU path)
    out_ref : (TB, 128) f32 lane-dense slab:
              softmax policy in lanes [0, A), sigmoid value in lane A, zeros else
    """
    x = x_ref[...]                                                   # (TB, S) f32

    # ---- trunk: fc1 (f32, K=state_dim) -> relu -> fc2 -> relu -> fc3 -> relu ----
    h = jnp.dot(x, w1_ref[...], preferred_element_type=jnp.float32) + b1_ref[...]
    h = jnp.maximum(h, 0.0)
    h = jnp.dot(h.astype(jnp.bfloat16), w2_ref[...],
                preferred_element_type=jnp.float32) + b2_ref[...]
    h = jnp.maximum(h, 0.0)
    h = jnp.dot(h.astype(jnp.bfloat16), w3_ref[...],
                preferred_element_type=jnp.float32) + b3_ref[...]
    h = jnp.maximum(h, 0.0)

    # ---- fused head hidden layer: [fc_policy_1 | fc_value_1] in one MXU pass ----
    hh = jnp.dot(h.astype(jnp.bfloat16), wh_ref[...],
                 preferred_element_type=jnp.float32) + bh_ref[...]
    hh = jnp.maximum(hh, 0.0)                                        # (TB, 256)

    # ---- policy tail: K=128 MXU pass (no zero-padded value block, v5e win) ----
    hp = hh[:, :FC3_DIM]                                             # (TB, 128)
    pre_p = jnp.dot(hp.astype(jnp.bfloat16), wt_ref[...],
                    preferred_element_type=jnp.float32) + bt_ref[...]

    # ---- value tail: VPU multiply + XLU lane reduce (no MXU pass) ----
    hv = hh[:, FC3_DIM:]                                             # (TB, 128)
    vpre = jnp.sum(hv * wvo_ref[...], axis=1, keepdims=True) + bvo_ref[...]

    lane = jax.lax.broadcasted_iota(jnp.int32, pre_p.shape, 1)
    pol_mask = lane < action_dim          # policy logits live in lanes [0, A)
    val_mask = lane == action_dim         # sigmoid value lives in lane A

    # ---- softmax over policy lanes: single full-tile exp, exact denominator ----
    logits = jnp.where(pol_mask, pre_p, jnp.float32(-1e30))
    m = jnp.max(logits, axis=1, keepdims=True)
    e = jnp.exp(logits - m)                          # masked lanes underflow to 0
    denom = jnp.sum(e, axis=1, keepdims=True)
    policy = e * (1.0 / denom)                       # exact: rows sum to 1

    # ---- numerically stable sigmoid on the (TB,1) value column (tiny EUP) ----
    ev = jnp.exp(-jnp.abs(vpre))
    r = pl.reciprocal(1.0 + ev, approx=True)
    sig = jnp.where(vpre >= 0.0, r, ev * r)

    out_ref[...] = jnp.where(pol_mask, policy, jnp.where(val_mask, sig, 0.0))


def init_linear(key, in_dim, out_dim):
    """PyTorch nn.Linear default init: U(-1/sqrt(in), 1/sqrt(in)); stored [in, out]."""
    kw, kb = jax.random.split(key)
    bound = 1.0 / jnp.sqrt(jnp.float32(in_dim))
    w = jax.random.uniform(kw, (in_dim, out_dim), jnp.float32, -bound, bound)
    b = jax.random.uniform(kb, (1, out_dim), jnp.float32, -bound, bound)
    return w, b


def _pad2d(a, rows, cols):
    return jnp.pad(a, ((0, rows - a.shape[0]), (0, cols - a.shape[1])))


def pack_params(params):
    """One-time weight layout prep: pad to lane-aligned shapes, fuse the two head
    hidden layers, split the value output into a VPU-reduction row, and cast the
    big matmul operands to bf16 (first layer + biases stay f32)."""
    state_dim = params["w1"].shape[0]
    action_dim = params["wpo"].shape[1]
    assert action_dim + 1 <= LANE, "policy + value must fit one 128-lane slab"

    bf16 = lambda a: a.astype(jnp.bfloat16)

    w1 = _pad2d(params["w1"], state_dim, LANE)        # (S, 128), stays f32
    b1 = _pad2d(params["b1"], 1, LANE)
    w2 = _pad2d(params["w2"], LANE, LANE)
    b2 = _pad2d(params["b2"], 1, LANE)
    w3 = _pad2d(params["w3"], LANE, LANE)
    b3 = _pad2d(params["b3"], 1, LANE)

    # fused head hidden layer: (128, 256) = [policy_1 | value_1]
    wh = jnp.concatenate([params["wp1"], params["wv1"]], axis=1)
    bh = jnp.concatenate([params["bp1"], params["bv1"]], axis=1)

    # policy output layer only: (128, 128), columns >= action_dim are zero
    wt = _pad2d(params["wpo"], FC3_DIM, LANE)
    bt = _pad2d(params["bpo"], 1, LANE)

    # value output layer as a lane row for the VPU/XLU reduction path
    wvo = _pad2d(params["wvo"].T, 1, LANE)            # (1, 128) f32
    bvo = params["bvo"].reshape(1, 1)                 # (1, 1) f32

    return {
        "w1": w1, "b1": b1,
        "w2": bf16(w2), "b2": b2,
        "w3": bf16(w3), "b3": b3,
        "wh": bf16(wh), "bh": bh,
        "wt": bf16(wt), "bt": bt,
        "wvo": wvo, "bvo": bvo,
        "action_dim": action_dim, "state_dim": state_dim,
    }


def _resident_spec(shape, single_buffer):
    """Weight/bias spec: constant block index -> DMA'd once, VMEM-resident.
    Optionally single-buffered (constant index_maps don't need double buffering)."""
    if single_buffer:
        return pl.BlockSpec(shape, lambda i: (0, 0), pipeline_mode=pl.Buffered(1))
    return pl.BlockSpec(shape, lambda i: (0, 0))


def _build_forward(tb, n_tiles, state_dim, action_dim, single_buffer_weights):
    res = lambda shape: _resident_spec(shape, single_buffer_weights)
    return pl.pallas_call(
        functools.partial(net_kernel, action_dim=action_dim),
        out_shape=jax.ShapeDtypeStruct((n_tiles * tb, LANE), jnp.float32),
        grid_spec=pltpu.PrefetchScalarGridSpec(
            num_scalar_prefetch=0,
            grid=(n_tiles,),
            in_specs=[
                pl.BlockSpec((tb, state_dim), lambda i: (i, 0)),     # x tile (f32)
                res((state_dim, LANE)), res((1, LANE)),              # fc1
                res((LANE, LANE)), res((1, LANE)),                   # fc2
                res((LANE, LANE)), res((1, LANE)),                   # fc3
                res((FC3_DIM, 2 * FC3_DIM)), res((1, 2 * FC3_DIM)),  # fused heads
                res((FC3_DIM, LANE)), res((1, LANE)),                # policy out
                res((1, LANE)), res((1, 1)),                         # value out
            ],
            out_specs=pl.BlockSpec((tb, LANE), lambda i: (i, 0)),
        ),
        compiler_params=pltpu.CompilerParams(
            dimension_semantics=("parallel",),     # batch tiles across TCs (v7x)
            vmem_limit_bytes=32 * 1024 * 1024,
        ),
    )


def net_forward(x, packed, *, block_batch=512):
    """Returns (policy, value) exactly as the PyTorch Net.forward."""
    action_dim = packed["action_dim"]
    batch, state_dim = x.shape
    assert state_dim == packed["state_dim"]

    # Batch tiling:
    #   * huge batches: 512-row tiles (amortizes per-step overhead, feeds MXU)
    #   * mid batches (>=256): split into exactly 2 tiles so grid >= 2 and
    #     both v7x TensorCores get work
    #   * tiny batches: single tile rounded to 16 rows (native bf16 sublane tile)
    if batch >= 2 * block_batch:
        tb = block_batch
    elif batch >= 256:
        tb = _round_up(-(-batch // 2), 16)
    else:
        tb = max(16, _round_up(batch, 16))
    padded_batch = _round_up(batch, tb)
    n_tiles = padded_batch // tb

    # No lane padding / dtype cast in the wrapper: x is passed with its true
    # state_dim last dim in f32 (full-dim block), so input HBM traffic is only
    # the real data.  Only the batch is padded (zero-copy when already aligned).
    xp = x if padded_batch == batch else jnp.pad(x, ((0, padded_batch - batch), (0, 0)))

    args = (xp,
            packed["w1"], packed["b1"],
            packed["w2"], packed["b2"],
            packed["w3"], packed["b3"],
            packed["wh"], packed["bh"],
            packed["wt"], packed["bt"],
            packed["wvo"], packed["bvo"])

    try:
        out_slab = _build_forward(tb, n_tiles, state_dim, action_dim, True)(*args)
        jax.block_until_ready(out_slab)
    except Exception:
        # Fallback: this Pallas build rejects pipeline_mode=pl.Buffered(1) for
        # constant-index inputs; use default double-buffered resident specs.
        out_slab = _build_forward(tb, n_tiles, state_dim, action_dim, False)(*args)

    p = out_slab[:batch, :action_dim]
    v = out_slab[:batch, action_dim:action_dim + 1]
    return p, v


def reference_forward(x, params):
    """Pure-JAX f32 reference matching the PyTorch module."""
    relu = lambda t: jnp.maximum(t, 0.0)
    h = relu(x @ params["w1"] + params["b1"])
    h = relu(h @ params["w2"] + params["b2"])
    h = relu(h @ params["w3"] + params["b3"])
    p = relu(h @ params["wp1"] + params["bp1"])
    p = jax.nn.softmax(p @ params["wpo"] + params["bpo"], axis=1)
    v = relu(h @ params["wv1"] + params["bv1"])
    v = jax.nn.sigmoid(v @ params["wvo"] + params["bvo"])
    return p, v


if __name__ == "__main__":
    state_dim = 8
    action_dim = 4
    batch = 2
    fc1_dim, fc2_dim, fc3_dim = 32, 64, 128

    key = jax.random.PRNGKey(0)
    keys = jax.random.split(key, 8)

    params = {}
    params["w1"], params["b1"] = init_linear(keys[0], state_dim, fc1_dim)
    params["w2"], params["b2"] = init_linear(keys[1], fc1_dim, fc2_dim)
    params["w3"], params["b3"] = init_linear(keys[2], fc2_dim, fc3_dim)
    params["wp1"], params["bp1"] = init_linear(keys[3], fc3_dim, fc3_dim)
    params["wpo"], params["bpo"] = init_linear(keys[4], fc3_dim, action_dim)
    params["wv1"], params["bv1"] = init_linear(keys[5], fc3_dim, fc3_dim)
    params["wvo"], params["bvo"] = init_linear(keys[6], fc3_dim, 1)

    x = jax.random.normal(keys[7], (batch, state_dim), jnp.float32)

    packed = pack_params(params)          # one-time weight layout prep
    p, v = net_forward(x, packed)
    jax.block_until_ready((p, v))

    assert p.shape == (batch, action_dim)
    assert v.shape == (batch, 1)
    # softmax rows sum to 1 (exact divide on the denominator)
    assert jnp.allclose(jnp.sum(p, axis=1), 1.0, atol=1e-2)
    # sigmoid strictly in (0, 1)
    assert bool(jnp.all((v > 0.0) & (v < 1.0)))
    # matches the f32 reference within bf16-MXU tolerance
    p_ref, v_ref = reference_forward(x, params)
    assert jnp.allclose(p, p_ref, atol=3e-2)
    assert jnp.allclose(v, v_ref, atol=3e-2)

    print("KERNEL_OK")
</pallas_src>

<mosaic_0001>
module attributes {stable_mosaic.version = 11 : i64} {
  func.func @net_kernel(%arg0: i32, %arg1: memref<16x8xf32, #tpu.memory_space<vmem>>, %arg2: memref<8x128xf32, #tpu.memory_space<vmem>>, %arg3: memref<1x128xf32, #tpu.memory_space<vmem>>, %arg4: memref<128x128xbf16, #tpu.memory_space<vmem>>, %arg5: memref<1x128xf32, #tpu.memory_space<vmem>>, %arg6: memref<128x128xbf16, #tpu.memory_space<vmem>>, %arg7: memref<1x128xf32, #tpu.memory_space<vmem>>, %arg8: memref<128x256xbf16, #tpu.memory_space<vmem>>, %arg9: memref<1x256xf32, #tpu.memory_space<vmem>>, %arg10: memref<128x128xbf16, #tpu.memory_space<vmem>>, %arg11: memref<1x128xf32, #tpu.memory_space<vmem>>, %arg12: memref<1x128xf32, #tpu.memory_space<vmem>>, %arg13: memref<1x1xf32, #tpu.memory_space<vmem>>, %arg14: memref<16x128xf32, #tpu.memory_space<vmem>>) attributes {dimension_semantics = [#tpu.dimension_semantics<parallel>], iteration_bounds = array<i64: 1>, scalar_prefetch = 0 : i64, scratch_operands = 0 : i64, tpu.core_type = #tpu.core_type<tc>, window_params = [{transform_indices = @transform_0, window_bounds = array<i64: 16, 8>}, {pipeline_mode = #tpu.pipeline_mode<synchronous>, transform_indices = @transform_1, window_bounds = array<i64: 8, 128>}, {pipeline_mode = #tpu.pipeline_mode<synchronous>, transform_indices = @transform_2, window_bounds = array<i64: 1, 128>}, {pipeline_mode = #tpu.pipeline_mode<synchronous>, transform_indices = @transform_3, window_bounds = array<i64: 128, 128>}, {pipeline_mode = #tpu.pipeline_mode<synchronous>, transform_indices = @transform_4, window_bounds = array<i64: 1, 128>}, {pipeline_mode = #tpu.pipeline_mode<synchronous>, transform_indices = @transform_5, window_bounds = array<i64: 128, 128>}, {pipeline_mode = #tpu.pipeline_mode<synchronous>, transform_indices = @transform_6, window_bounds = array<i64: 1, 128>}, {pipeline_mode = #tpu.pipeline_mode<synchronous>, transform_indices = @transform_7, window_bounds = array<i64: 128, 256>}, {pipeline_mode = #tpu.pipeline_mode<synchronous>, transform_indices = @transform_8, window_bounds = array<i64: 1, 256>}, {pipeline_mode = #tpu.pipeline_mode<synchronous>, transform_indices = @transform_9, window_bounds = array<i64: 128, 128>}, {pipeline_mode = #tpu.pipeline_mode<synchronous>, transform_indices = @transform_10, window_bounds = array<i64: 1, 128>}, {pipeline_mode = #tpu.pipeline_mode<synchronous>, transform_indices = @transform_11, window_bounds = array<i64: 1, 128>}, {pipeline_mode = #tpu.pipeline_mode<synchronous>, transform_indices = @transform_12, window_bounds = array<i64: 1, 1>}, {transform_indices = @transform_13, window_bounds = array<i64: 16, 128>}]} {
    %c0 = arith.constant 0 : index
    %c0_0 = arith.constant 0 : index
    %0 = vector.load %arg1[%c0, %c0_0] : memref<16x8xf32, #tpu.memory_space<vmem>>, vector<16x8xf32>
    %c0_1 = arith.constant 0 : index
    %c0_2 = arith.constant 0 : index
    %1 = vector.load %arg2[%c0_1, %c0_2] : memref<8x128xf32, #tpu.memory_space<vmem>>, vector<8x128xf32>
    %cst = arith.constant dense<0.000000e+00> : vector<16x128xf32>
    %2 = tpu.matmul %0, %1, %cst {dimension_numbers = #tpu.dot_dimension_numbers<[1], [0], [0], [1], [0, 0, 1, 1], [], []>} : vector<16x8xf32>, vector<8x128xf32>, vector<16x128xf32> -> vector<16x128xf32>
    %c0_3 = arith.constant 0 : index
    %c0_4 = arith.constant 0 : index
    %3 = vector.load %arg3[%c0_3, %c0_4] : memref<1x128xf32, #tpu.memory_space<vmem>>, vector<1x128xf32>
    %4 = vector.broadcast %3 : vector<1x128xf32> to vector<16x128xf32>
    %5 = arith.addf %2, %4 : vector<16x128xf32>
    %cst_5 = arith.constant 0.000000e+00 : f32
    %6 = vector.broadcast %cst_5 : f32 to vector<16x128xf32>
    %7 = arith.maximumf %5, %6 : vector<16x128xf32>
    %8 = arith.truncf %7 : vector<16x128xf32> to vector<16x128xbf16>
    %c0_6 = arith.constant 0 : index
    %c0_7 = arith.constant 0 : index
    %9 = vector.load %arg4[%c0_6, %c0_7] : memref<128x128xbf16, #tpu.memory_space<vmem>>, vector<128x128xbf16>
    %cst_8 = arith.constant dense<0.000000e+00> : vector<16x128xf32>
    %10 = tpu.matmul %8, %9, %cst_8 {dimension_numbers = #tpu.dot_dimension_numbers<[1], [0], [0], [1], [0, 0, 1, 1], [], []>} : vector<16x128xbf16>, vector<128x128xbf16>, vector<16x128xf32> -> vector<16x128xf32>
    %c0_9 = arith.constant 0 : index
    %c0_10 = arith.constant 0 : index
    %11 = vector.load %arg5[%c0_9, %c0_10] : memref<1x128xf32, #tpu.memory_space<vmem>>, vector<1x128xf32>
    %12 = vector.broadcast %11 : vector<1x128xf32> to vector<16x128xf32>
    %13 = arith.addf %10, %12 : vector<16x128xf32>
    %cst_11 = arith.constant 0.000000e+00 : f32
    %14 = vector.broadcast %cst_11 : f32 to vector<16x128xf32>
    %15 = arith.maximumf %13, %14 : vector<16x128xf32>
    %16 = arith.truncf %15 : vector<16x128xf32> to vector<16x128xbf16>
    %c0_12 = arith.constant 0 : index
    %c0_13 = arith.constant 0 : index
    %17 = vector.load %arg6[%c0_12, %c0_13] : memref<128x128xbf16, #tpu.memory_space<vmem>>, vector<128x128xbf16>
    %cst_14 = arith.constant dense<0.000000e+00> : vector<16x128xf32>
    %18 = tpu.matmul %16, %17, %cst_14 {dimension_numbers = #tpu.dot_dimension_numbers<[1], [0], [0], [1], [0, 0, 1, 1], [], []>} : vector<16x128xbf16>, vector<128x128xbf16>, vector<16x128xf32> -> vector<16x128xf32>
    %c0_15 = arith.constant 0 : index
    %c0_16 = arith.constant 0 : index
    %19 = vector.load %arg7[%c0_15, %c0_16] : memref<1x128xf32, #tpu.memory_space<vmem>>, vector<1x128xf32>
    %20 = vector.broadcast %19 : vector<1x128xf32> to vector<16x128xf32>
    %21 = arith.addf %18, %20 : vector<16x128xf32>
    %cst_17 = arith.constant 0.000000e+00 : f32
    %22 = vector.broadcast %cst_17 : f32 to vector<16x128xf32>
    %23 = arith.maximumf %21, %22 : vector<16x128xf32>
    %24 = arith.truncf %23 : vector<16x128xf32> to vector<16x128xbf16>
    %c0_18 = arith.constant 0 : index
    %c0_19 = arith.constant 0 : index
    %25 = vector.load %arg8[%c0_18, %c0_19] : memref<128x256xbf16, #tpu.memory_space<vmem>>, vector<128x256xbf16>
    %cst_20 = arith.constant dense<0.000000e+00> : vector<16x256xf32>
    %26 = tpu.matmul %24, %25, %cst_20 {dimension_numbers = #tpu.dot_dimension_numbers<[1], [0], [0], [1], [0, 0, 1, 1], [], []>} : vector<16x128xbf16>, vector<128x256xbf16>, vector<16x256xf32> -> vector<16x256xf32>
    %c0_21 = arith.constant 0 : index
    %c0_22 = arith.constant 0 : index
    %27 = vector.load %arg9[%c0_21, %c0_22] : memref<1x256xf32, #tpu.memory_space<vmem>>, vector<1x256xf32>
    %28 = vector.broadcast %27 : vector<1x256xf32> to vector<16x256xf32>
    %29 = arith.addf %26, %28 : vector<16x256xf32>
    %cst_23 = arith.constant 0.000000e+00 : f32
    %30 = vector.broadcast %cst_23 : f32 to vector<16x256xf32>
    %31 = arith.maximumf %29, %30 : vector<16x256xf32>
    %32 = vector.extract_strided_slice %31 {offsets = [0, 0], sizes = [16, 128], strides = [1, 1]} : vector<16x256xf32> to vector<16x128xf32>
    %33 = arith.truncf %32 : vector<16x128xf32> to vector<16x128xbf16>
    %c0_24 = arith.constant 0 : index
    %c0_25 = arith.constant 0 : index
    %34 = vector.load %arg10[%c0_24, %c0_25] : memref<128x128xbf16, #tpu.memory_space<vmem>>, vector<128x128xbf16>
    %cst_26 = arith.constant dense<0.000000e+00> : vector<16x128xf32>
    %35 = tpu.matmul %33, %34, %cst_26 {dimension_numbers = #tpu.dot_dimension_numbers<[1], [0], [0], [1], [0, 0, 1, 1], [], []>} : vector<16x128xbf16>, vector<128x128xbf16>, vector<16x128xf32> -> vector<16x128xf32>
    %c0_27 = arith.constant 0 : index
    %c0_28 = arith.constant 0 : index
    %36 = vector.load %arg11[%c0_27, %c0_28] : memref<1x128xf32, #tpu.memory_space<vmem>>, vector<1x128xf32>
    %37 = vector.broadcast %36 : vector<1x128xf32> to vector<16x128xf32>
    %38 = arith.addf %35, %37 : vector<16x128xf32>
    %39 = vector.extract_strided_slice %31 {offsets = [0, 128], sizes = [16, 128], strides = [1, 1]} : vector<16x256xf32> to vector<16x128xf32>
    %c0_29 = arith.constant 0 : index
    %c0_30 = arith.constant 0 : index
    %40 = vector.load %arg12[%c0_29, %c0_30] : memref<1x128xf32, #tpu.memory_space<vmem>>, vector<1x128xf32>
    %41 = vector.broadcast %40 : vector<1x128xf32> to vector<16x128xf32>
    %42 = arith.mulf %39, %41 : vector<16x128xf32>
    %cst_31 = arith.constant dense<0.000000e+00> : vector<16xf32>
    %43 = vector.multi_reduction <add>, %42, %cst_31 [1] : vector<16x128xf32> to vector<16xf32>
    %44 = vector.shape_cast %43 : vector<16xf32> to vector<16x1xf32>
    %c0_32 = arith.constant 0 : index
    %c0_33 = arith.constant 0 : index
    %45 = vector.load %arg13[%c0_32, %c0_33] : memref<1x1xf32, #tpu.memory_space<vmem>>, vector<1x1xf32>
    %46 = vector.broadcast %45 : vector<1x1xf32> to vector<16x1xf32>
    %47 = arith.addf %44, %46 : vector<16x1xf32>
    %48 = tpu.iota {dimensions = array<i32: 1>} : vector<16x128xi32>
    %c4_i32 = arith.constant 4 : i32
    %49 = vector.broadcast %c4_i32 : i32 to vector<16x128xi32>
    %50 = arith.cmpi slt, %48, %49 : vector<16x128xi32>
    %c4_i32_34 = arith.constant 4 : i32
    %51 = vector.broadcast %c4_i32_34 : i32 to vector<16x128xi32>
    %52 = arith.cmpi eq, %48, %51 : vector<16x128xi32>
    %cst_35 = arith.constant -1.000000e+30 : f32
    %53 = vector.broadcast %cst_35 : f32 to vector<16x128xf32>
    %54 = arith.select %50, %38, %53 : vector<16x128xi1>, vector<16x128xf32>
    %cst_36 = arith.constant dense<0xFF800000> : vector<16xf32>
    %55 = vector.multi_reduction <maximumf>, %54, %cst_36 [1] : vector<16x128xf32> to vector<16xf32>
    %56 = vector.shape_cast %55 : vector<16xf32> to vector<16x1xf32>
    %57 = vector.broadcast %56 : vector<16x1xf32> to vector<16x128xf32>
    %58 = arith.subf %54, %57 : vector<16x128xf32>
    %59 = math.exp %58 : vector<16x128xf32>
    %cst_37 = arith.constant dense<0.000000e+00> : vector<16xf32>
    %60 = vector.multi_reduction <add>, %59, %cst_37 [1] : vector<16x128xf32> to vector<16xf32>
    %61 = vector.shape_cast %60 : vector<16xf32> to vector<16x1xf32>
    %cst_38 = arith.constant 1.000000e+00 : f32
    %62 = vector.broadcast %cst_38 : f32 to vector<16x1xf32>
    %63 = arith.divf %62, %61 : vector<16x1xf32>
    %64 = vector.broadcast %63 : vector<16x1xf32> to vector<16x128xf32>
    %65 = arith.mulf %59, %64 : vector<16x128xf32>
    %66 = math.absf %47 : vector<16x1xf32>
    %cst_39 = arith.constant 0.000000e+00 : f32
    %67 = vector.broadcast %cst_39 : f32 to vector<16x1xf32>
    %68 = arith.subf %67, %66 : vector<16x1xf32>
    %69 = math.exp %68 : vector<16x1xf32>
    %cst_40 = arith.constant 1.000000e+00 : f32
    %70 = vector.broadcast %cst_40 : f32 to vector<16x1xf32>
    %71 = arith.addf %70, %69 : vector<16x1xf32>
    %72 = tpu.reciprocal %71 {approx = true} : vector<16x1xf32> -> vector<16x1xf32>
    %cst_41 = arith.constant 0.000000e+00 : f32
    %73 = vector.broadcast %cst_41 : f32 to vector<16x1xf32>
    %74 = arith.cmpf oge, %47, %73 : vector<16x1xf32>
    %75 = arith.mulf %69, %72 : vector<16x1xf32>
    %76 = arith.select %74, %72, %75 : vector<16x1xi1>, vector<16x1xf32>
    %cst_42 = arith.constant 0.000000e+00 : f32
    %77 = vector.shape_cast %76 : vector<16x1xf32> to vector<16x1xf32>
    %78 = vector.broadcast %77 : vector<16x1xf32> to vector<16x128xf32>
    %79 = vector.broadcast %cst_42 : f32 to vector<16x128xf32>
    %80 = arith.select %52, %78, %79 : vector<16x128xi1>, vector<16x128xf32>
    %81 = arith.select %50, %65, %80 : vector<16x128xi1>, vector<16x128xf32>
    %c0_43 = arith.constant 0 : index
    %c0_44 = arith.constant 0 : index
    %82 = vector.load %arg14[%c0_43, %c0_44] : memref<16x128xf32, #tpu.memory_space<vmem>>, vector<16x128xf32>
    tpu.vector_store %arg14[%c0_43, %c0_44], %81 {strides = array<i32>} : memref<16x128xf32, #tpu.memory_space<vmem>>, vector<16x128xf32>,
    return
  }
  func.func @transform_0(%arg0: i32) -> (i32, i32) {
    %c0_i32 = arith.constant 0 : i32
    %c0_i32_0 = arith.constant 0 : i32
    return %arg0, %c0_i32 : i32, i32
  }
  func.func @transform_1(%arg0: i32) -> (i32, i32) {
    %c0_i32 = arith.constant 0 : i32
    %c0_i32_0 = arith.constant 0 : i32
    %c0_i32_1 = arith.constant 0 : i32
    return %c0_i32, %c0_i32_0 : i32, i32
  }
  func.func @transform_2(%arg0: i32) -> (i32, i32) {
    %c0_i32 = arith.constant 0 : i32
    %c0_i32_0 = arith.constant 0 : i32
    %c0_i32_1 = arith.constant 0 : i32
    return %c0_i32, %c0_i32_0 : i32, i32
  }
  func.func @transform_3(%arg0: i32) -> (i32, i32) {
    %c0_i32 = arith.constant 0 : i32
    %c0_i32_0 = arith.constant 0 : i32
    %c0_i32_1 = arith.constant 0 : i32
    return %c0_i32, %c0_i32_0 : i32, i32
  }
  func.func @transform_4(%arg0: i32) -> (i32, i32) {
    %c0_i32 = arith.constant 0 : i32
    %c0_i32_0 = arith.constant 0 : i32
    %c0_i32_1 = arith.constant 0 : i32
    return %c0_i32, %c0_i32_0 : i32, i32
  }
  func.func @transform_5(%arg0: i32) -> (i32, i32) {
    %c0_i32 = arith.constant 0 : i32
    %c0_i32_0 = arith.constant 0 : i32
    %c0_i32_1 = arith.constant 0 : i32
    return %c0_i32, %c0_i32_0 : i32, i32
  }
  func.func @transform_6(%arg0: i32) -> (i32, i32) {
    %c0_i32 = arith.constant 0 : i32
    %c0_i32_0 = arith.constant 0 : i32
    %c0_i32_1 = arith.constant 0 : i32
    return %c0_i32, %c0_i32_0 : i32, i32
  }
  func.func @transform_7(%arg0: i32) -> (i32, i32) {
    %c0_i32 = arith.constant 0 : i32
    %c0_i32_0 = arith.constant 0 : i32
    %c0_i32_1 = arith.constant 0 : i32
    return %c0_i32, %c0_i32_0 : i32, i32
  }
  func.func @transform_8(%arg0: i32) -> (i32, i32) {
    %c0_i32 = arith.constant 0 : i32
    %c0_i32_0 = arith.constant 0 : i32
    %c0_i32_1 = arith.constant 0 : i32
    return %c0_i32, %c0_i32_0 : i32, i32
  }
  func.func @transform_9(%arg0: i32) -> (i32, i32) {
    %c0_i32 = arith.constant 0 : i32
    %c0_i32_0 = arith.constant 0 : i32
    %c0_i32_1 = arith.constant 0 : i32
    return %c0_i32, %c0_i32_0 : i32, i32
  }
  func.func @transform_10(%arg0: i32) -> (i32, i32) {
    %c0_i32 = arith.constant 0 : i32
    %c0_i32_0 = arith.constant 0 : i32
    %c0_i32_1 = arith.constant 0 : i32
    return %c0_i32, %c0_i32_0 : i32, i32
  }
  func.func @transform_11(%arg0: i32) -> (i32, i32) {
    %c0_i32 = arith.constant 0 : i32
    %c0_i32_0 = arith.constant 0 : i32
    %c0_i32_1 = arith.constant 0 : i32
    return %c0_i32, %c0_i32_0 : i32, i32
  }
  func.func @transform_12(%arg0: i32) -> (i32, i32) {
    %c0_i32 = arith.constant 0 : i32
    %c0_i32_0 = arith.constant 0 : i32
    %c0_i32_1 = arith.constant 0 : i32
    return %c0_i32, %c0_i32_0 : i32, i32
  }
  func.func @transform_13(%arg0: i32) -> (i32, i32) {
    %c0_i32 = arith.constant 0 : i32
    %c0_i32_0 = arith.constant 0 : i32
    return %arg0, %c0_i32 : i32, i32
  }
}

module attributes {stable_mosaic.version = 11 : i64} {
  func.func @net_kernel(%arg0: i32, %arg1: memref<16x8xf32, #tpu.memory_space<vmem>>, %arg2: memref<8x128xf32, #tpu.memory_space<vmem>>, %arg3: memref<1x128xf32, #tpu.memory_space<vmem>>, %arg4: memref<128x128xbf16, #tpu.memory_space<vmem>>, %arg5: memref<1x128xf32, #tpu.memory_space<vmem>>, %arg6: memref<128x128xbf16, #tpu.memory_space<vmem>>, %arg7: memref<1x128xf32, #tpu.memory_space<vmem>>, %arg8: memref<128x256xbf16, #tpu.memory_space<vmem>>, %arg9: memref<1x256xf32, #tpu.memory_space<vmem>>, %arg10: memref<128x128xbf16, #tpu.memory_space<vmem>>, %arg11: memref<1x128xf32, #tpu.memory_space<vmem>>, %arg12: memref<1x128xf32, #tpu.memory_space<vmem>>, %arg13: memref<1x1xf32, #tpu.memory_space<vmem>>, %arg14: memref<16x128xf32, #tpu.memory_space<vmem>>) attributes {dimension_semantics = [#tpu.dimension_semantics<parallel>], iteration_bounds = array<i64: 1>, scalar_prefetch = 0 : i64, scratch_operands = 0 : i64, tpu.core_type = #tpu.core_type<tc>, window_params = [{transform_indices = @transform_0, window_bounds = array<i64: 16, 8>}, {pipeline_mode = #tpu.pipeline_mode<synchronous>, transform_indices = @transform_1, window_bounds = array<i64: 8, 128>}, {pipeline_mode = #tpu.pipeline_mode<synchronous>, transform_indices = @transform_2, window_bounds = array<i64: 1, 128>}, {pipeline_mode = #tpu.pipeline_mode<synchronous>, transform_indices = @transform_3, window_bounds = array<i64: 128, 128>}, {pipeline_mode = #tpu.pipeline_mode<synchronous>, transform_indices = @transform_4, window_bounds = array<i64: 1, 128>}, {pipeline_mode = #tpu.pipeline_mode<synchronous>, transform_indices = @transform_5, window_bounds = array<i64: 128, 128>}, {pipeline_mode = #tpu.pipeline_mode<synchronous>, transform_indices = @transform_6, window_bounds = array<i64: 1, 128>}, {pipeline_mode = #tpu.pipeline_mode<synchronous>, transform_indices = @transform_7, window_bounds = array<i64: 128, 256>}, {pipeline_mode = #tpu.pipeline_mode<synchronous>, transform_indices = @transform_8, window_bounds = array<i64: 1, 256>}, {pipeline_mode = #tpu.pipeline_mode<synchronous>, transform_indices = @transform_9, window_bounds = array<i64: 128, 128>}, {pipeline_mode = #tpu.pipeline_mode<synchronous>, transform_indices = @transform_10, window_bounds = array<i64: 1, 128>}, {pipeline_mode = #tpu.pipeline_mode<synchronous>, transform_indices = @transform_11, window_bounds = array<i64: 1, 128>}, {pipeline_mode = #tpu.pipeline_mode<synchronous>, transform_indices = @transform_12, window_bounds = array<i64: 1, 1>}, {transform_indices = @transform_13, window_bounds = array<i64: 16, 128>}]} {
    %c0 = arith.constant 0 : index
    %c0_0 = arith.constant 0 : index
    %0 = vector.load %arg1[%c0, %c0_0] : memref<16x8xf32, #tpu.memory_space<vmem>>, vector<16x8xf32>
    %c0_1 = arith.constant 0 : index
    %c0_2 = arith.constant 0 : index
    %1 = vector.load %arg2[%c0_1, %c0_2] : memref<8x128xf32, #tpu.memory_space<vmem>>, vector<8x128xf32>
    %cst = arith.constant dense<0.000000e+00> : vector<16x128xf32>
    %2 = tpu.matmul %0, %1, %cst {dimension_numbers = #tpu.dot_dimension_numbers<[1], [0], [0], [1], [0, 0, 1, 1], [], []>} : vector<16x8xf32>, vector<8x128xf32>, vector<16x128xf32> -> vector<16x128xf32>
    %c0_3 = arith.constant 0 : index
    %c0_4 = arith.constant 0 : index
    %3 = vector.load %arg3[%c0_3, %c0_4] : memref<1x128xf32, #tpu.memory_space<vmem>>, vector<1x128xf32>
    %4 = vector.broadcast %3 : vector<1x128xf32> to vector<16x128xf32>
    %5 = arith.addf %2, %4 : vector<16x128xf32>
    %cst_5 = arith.constant 0.000000e+00 : f32
    %6 = vector.broadcast %cst_5 : f32 to vector<16x128xf32>
    %7 = arith.maximumf %5, %6 : vector<16x128xf32>
    %8 = arith.truncf %7 : vector<16x128xf32> to vector<16x128xbf16>
    %c0_6 = arith.constant 0 : index
    %c0_7 = arith.constant 0 : index
    %9 = vector.load %arg4[%c0_6, %c0_7] : memref<128x128xbf16, #tpu.memory_space<vmem>>, vector<128x128xbf16>
    %cst_8 = arith.constant dense<0.000000e+00> : vector<16x128xf32>
    %10 = tpu.matmul %8, %9, %cst_8 {dimension_numbers = #tpu.dot_dimension_numbers<[1], [0], [0], [1], [0, 0, 1, 1], [], []>} : vector<16x128xbf16>, vector<128x128xbf16>, vector<16x128xf32> -> vector<16x128xf32>
    %c0_9 = arith.constant 0 : index
    %c0_10 = arith.constant 0 : index
    %11 = vector.load %arg5[%c0_9, %c0_10] : memref<1x128xf32, #tpu.memory_space<vmem>>, vector<1x128xf32>
    %12 = vector.broadcast %11 : vector<1x128xf32> to vector<16x128xf32>
    %13 = arith.addf %10, %12 : vector<16x128xf32>
    %cst_11 = arith.constant 0.000000e+00 : f32
    %14 = vector.broadcast %cst_11 : f32 to vector<16x128xf32>
    %15 = arith.maximumf %13, %14 : vector<16x128xf32>
    %16 = arith.truncf %15 : vector<16x128xf32> to vector<16x128xbf16>
    %c0_12 = arith.constant 0 : index
    %c0_13 = arith.constant 0 : index
    %17 = vector.load %arg6[%c0_12, %c0_13] : memref<128x128xbf16, #tpu.memory_space<vmem>>, vector<128x128xbf16>
    %cst_14 = arith.constant dense<0.000000e+00> : vector<16x128xf32>
    %18 = tpu.matmul %16, %17, %cst_14 {dimension_numbers = #tpu.dot_dimension_numbers<[1], [0], [0], [1], [0, 0, 1, 1], [], []>} : vector<16x128xbf16>, vector<128x128xbf16>, vector<16x128xf32> -> vector<16x128xf32>
    %c0_15 = arith.constant 0 : index
    %c0_16 = arith.constant 0 : index
    %19 = vector.load %arg7[%c0_15, %c0_16] : memref<1x128xf32, #tpu.memory_space<vmem>>, vector<1x128xf32>
    %20 = vector.broadcast %19 : vector<1x128xf32> to vector<16x128xf32>
    %21 = arith.addf %18, %20 : vector<16x128xf32>
    %cst_17 = arith.constant 0.000000e+00 : f32
    %22 = vector.broadcast %cst_17 : f32 to vector<16x128xf32>
    %23 = arith.maximumf %21, %22 : vector<16x128xf32>
    %24 = arith.truncf %23 : vector<16x128xf32> to vector<16x128xbf16>
    %c0_18 = arith.constant 0 : index
    %c0_19 = arith.constant 0 : index
    %25 = vector.load %arg8[%c0_18, %c0_19] : memref<128x256xbf16, #tpu.memory_space<vmem>>, vector<128x256xbf16>
    %cst_20 = arith.constant dense<0.000000e+00> : vector<16x256xf32>
    %26 = tpu.matmul %24, %25, %cst_20 {dimension_numbers = #tpu.dot_dimension_numbers<[1], [0], [0], [1], [0, 0, 1, 1], [], []>} : vector<16x128xbf16>, vector<128x256xbf16>, vector<16x256xf32> -> vector<16x256xf32>
    %c0_21 = arith.constant 0 : index
    %c0_22 = arith.constant 0 : index
    %27 = vector.load %arg9[%c0_21, %c0_22] : memref<1x256xf32, #tpu.memory_space<vmem>>, vector<1x256xf32>
    %28 = vector.broadcast %27 : vector<1x256xf32> to vector<16x256xf32>
    %29 = arith.addf %26, %28 : vector<16x256xf32>
    %cst_23 = arith.constant 0.000000e+00 : f32
    %30 = vector.broadcast %cst_23 : f32 to vector<16x256xf32>
    %31 = arith.maximumf %29, %30 : vector<16x256xf32>
    %32 = vector.extract_strided_slice %31 {offsets = [0, 0], sizes = [16, 128], strides = [1, 1]} : vector<16x256xf32> to vector<16x128xf32>
    %33 = arith.truncf %32 : vector<16x128xf32> to vector<16x128xbf16>
    %c0_24 = arith.constant 0 : index
    %c0_25 = arith.constant 0 : index
    %34 = vector.load %arg10[%c0_24, %c0_25] : memref<128x128xbf16, #tpu.memory_space<vmem>>, vector<128x128xbf16>
    %cst_26 = arith.constant dense<0.000000e+00> : vector<16x128xf32>
    %35 = tpu.matmul %33, %34, %cst_26 {dimension_numbers = #tpu.dot_dimension_numbers<[1], [0], [0], [1], [0, 0, 1, 1], [], []>} : vector<16x128xbf16>, vector<128x128xbf16>, vector<16x128xf32> -> vector<16x128xf32>
    %c0_27 = arith.constant 0 : index
    %c0_28 = arith.constant 0 : index
    %36 = vector.load %arg11[%c0_27, %c0_28] : memref<1x128xf32, #tpu.memory_space<vmem>>, vector<1x128xf32>
    %37 = vector.broadcast %36 : vector<1x128xf32> to vector<16x128xf32>
    %38 = arith.addf %35, %37 : vector<16x128xf32>
    %39 = vector.extract_strided_slice %31 {offsets = [0, 128], sizes = [16, 128], strides = [1, 1]} : vector<16x256xf32> to vector<16x128xf32>
    %c0_29 = arith.constant 0 : index
    %c0_30 = arith.constant 0 : index
    %40 = vector.load %arg12[%c0_29, %c0_30] : memref<1x128xf32, #tpu.memory_space<vmem>>, vector<1x128xf32>
    %41 = vector.broadcast %40 : vector<1x128xf32> to vector<16x128xf32>
    %42 = arith.mulf %39, %41 : vector<16x128xf32>
    %cst_31 = arith.constant dense<0.000000e+00> : vector<16xf32>
    %43 = vector.multi_reduction <add>, %42, %cst_31 [1] : vector<16x128xf32> to vector<16xf32>
    %44 = vector.shape_cast %43 : vector<16xf32> to vector<16x1xf32>
    %c0_32 = arith.constant 0 : index
    %c0_33 = arith.constant 0 : index
    %45 = vector.load %arg13[%c0_32, %c0_33] : memref<1x1xf32, #tpu.memory_space<vmem>>, vector<1x1xf32>
    %46 = vector.broadcast %45 : vector<1x1xf32> to vector<16x1xf32>
    %47 = arith.addf %44, %46 : vector<16x1xf32>
    %48 = tpu.iota {dimensions = array<i32: 1>} : vector<16x128xi32>
    %c4_i32 = arith.constant 4 : i32
    %49 = vector.broadcast %c4_i32 : i32 to vector<16x128xi32>
    %50 = arith.cmpi slt, %48, %49 : vector<16x128xi32>
    %c4_i32_34 = arith.constant 4 : i32
    %51 = vector.broadcast %c4_i32_34 : i32 to vector<16x128xi32>
    %52 = arith.cmpi eq, %48, %51 : vector<16x128xi32>
    %cst_35 = arith.constant -1.000000e+30 : f32
    %53 = vector.broadcast %cst_35 : f32 to vector<16x128xf32>
    %54 = arith.select %50, %38, %53 : vector<16x128xi1>, vector<16x128xf32>
    %cst_36 = arith.constant dense<0xFF800000> : vector<16xf32>
    %55 = vector.multi_reduction <maximumf>, %54, %cst_36 [1] : vector<16x128xf32> to vector<16xf32>
    %56 = vector.shape_cast %55 : vector<16xf32> to vector<16x1xf32>
    %57 = vector.broadcast %56 : vector<16x1xf32> to vector<16x128xf32>
    %58 = arith.subf %54, %57 : vector<16x128xf32>
    %59 = math.exp %58 : vector<16x128xf32>
    %cst_37 = arith.constant dense<0.000000e+00> : vector<16xf32>
    %60 = vector.multi_reduction <add>, %59, %cst_37 [1] : vector<16x128xf32> to vector<16xf32>
    %61 = vector.shape_cast %60 : vector<16xf32> to vector<16x1xf32>
    %cst_38 = arith.constant 1.000000e+00 : f32
    %62 = vector.broadcast %cst_38 : f32 to vector<16x1xf32>
    %63 = arith.divf %62, %61 : vector<16x1xf32>
    %64 = vector.broadcast %63 : vector<16x1xf32> to vector<16x128xf32>
    %65 = arith.mulf %59, %64 : vector<16x128xf32>
    %66 = math.absf %47 : vector<16x1xf32>
    %cst_39 = arith.constant 0.000000e+00 : f32
    %67 = vector.broadcast %cst_39 : f32 to vector<16x1xf32>
    %68 = arith.subf %67, %66 : vector<16x1xf32>
    %69 = math.exp %68 : vector<16x1xf32>
    %cst_40 = arith.constant 1.000000e+00 : f32
    %70 = vector.broadcast %cst_40 : f32 to vector<16x1xf32>
    %71 = arith.addf %70, %69 : vector<16x1xf32>
    %72 = tpu.reciprocal %71 {approx = true} : vector<16x1xf32> -> vector<16x1xf32>
    %cst_41 = arith.constant 0.000000e+00 : f32
    %73 = vector.broadcast %cst_41 : f32 to vector<16x1xf32>
    %74 = arith.cmpf oge, %47, %73 : vector<16x1xf32>
    %75 = arith.mulf %69, %72 : vector<16x1xf32>
    %76 = arith.select %74, %72, %75 : vector<16x1xi1>, vector<16x1xf32>
    %cst_42 = arith.constant 0.000000e+00 : f32
    %77 = vector.shape_cast %76 : vector<16x1xf32> to vector<16x1xf32>
    %78 = vector.broadcast %77 : vector<16x1xf32> to vector<16x128xf32>
    %79 = vector.broadcast %cst_42 : f32 to vector<16x128xf32>
    %80 = arith.select %52, %78, %79 : vector<16x128xi1>, vector<16x128xf32>
    %81 = arith.select %50, %65, %80 : vector<16x128xi1>, vector<16x128xf32>
    %c0_43 = arith.constant 0 : index
    %c0_44 = arith.constant 0 : index
    %82 = vector.load %arg14[%c0_43, %c0_44] : memref<16x128xf32, #tpu.memory_space<vmem>>, vector<16x128xf32>
    tpu.vector_store %arg14[%c0_43, %c0_44], %81 {strides = array<i32>} : memref<16x128xf32, #tpu.memory_space<vmem>>, vector<16x128xf32>,
    return
  }
  func.func @transform_0(%arg0: i32) -> (i32, i32) {
    %c0_i32 = arith.constant 0 : i32
    %c0_i32_0 = arith.constant 0 : i32
    return %arg0, %c0_i32 : i32, i32
  }
  func.func @transform_1(%arg0: i32) -> (i32, i32) {
    %c0_i32 = arith.constant 0 : i32
    %c0_i32_0 = arith.constant 0 : i32
    %c0_i32_1 = arith.constant 0 : i32
    return %c0_i32, %c0_i32_0 : i32, i32
  }
  func.func @transform_2(%arg0: i32) -> (i32, i32) {
    %c0_i32 = arith.constant 0 : i32
    %c0_i32_0 = arith.constant 0 : i32
    %c0_i32_1 = arith.constant 0 : i32
    return %c0_i32, %c0_i32_0 : i32, i32
  }
  func.func @transform_3(%arg0: i32) -> (i32, i32) {
    %c0_i32 = arith.constant 0 : i32
    %c0_i32_0 = arith.constant 0 : i32
    %c0_i32_1 = arith.constant 0 : i32
    return %c0_i32, %c0_i32_0 : i32, i32
  }
  func.func @transform_4(%arg0: i32) -> (i32, i32) {
    %c0_i32 = arith.constant 0 : i32
    %c0_i32_0 = arith.constant 0 : i32
    %c0_i32_1 = arith.constant 0 : i32
    return %c0_i32, %c0_i32_0 : i32, i32
  }
  func.func @transform_5(%arg0: i32) -> (i32, i32) {
    %c0_i32 = arith.constant 0 : i32
    %c0_i32_0 = arith.constant 0 : i32
    %c0_i32_1 = arith.constant 0 : i32
    return %c0_i32, %c0_i32_0 : i32, i32
  }
  func.func @transform_6(%arg0: i32) -> (i32, i32) {
    %c0_i32 = arith.constant 0 : i32
    %c0_i32_0 = arith.constant 0 : i32
    %c0_i32_1 = arith.constant 0 : i32
    return %c0_i32, %c0_i32_0 : i32, i32
  }
  func.func @transform_7(%arg0: i32) -> (i32, i32) {
    %c0_i32 = arith.constant 0 : i32
    %c0_i32_0 = arith.constant 0 : i32
    %c0_i32_1 = arith.constant 0 : i32
    return %c0_i32, %c0_i32_0 : i32, i32
  }
  func.func @transform_8(%arg0: i32) -> (i32, i32) {
    %c0_i32 = arith.constant 0 : i32
    %c0_i32_0 = arith.constant 0 : i32
    %c0_i32_1 = arith.constant 0 : i32
    return %c0_i32, %c0_i32_0 : i32, i32
  }
  func.func @transform_9(%arg0: i32) -> (i32, i32) {
    %c0_i32 = arith.constant 0 : i32
    %c0_i32_0 = arith.constant 0 : i32
    %c0_i32_1 = arith.constant 0 : i32
    return %c0_i32, %c0_i32_0 : i32, i32
  }
  func.func @transform_10(%arg0: i32) -> (i32, i32) {
    %c0_i32 = arith.constant 0 : i32
    %c0_i32_0 = arith.constant 0 : i32
    %c0_i32_1 = arith.constant 0 : i32
    return %c0_i32, %c0_i32_0 : i32, i32
  }
  func.func @transform_11(%arg0: i32) -> (i32, i32) {
    %c0_i32 = arith.constant 0 : i32
    %c0_i32_0 = arith.constant 0 : i32
    %c0_i32_1 = arith.constant 0 : i32
    return %c0_i32, %c0_i32_0 : i32, i32
  }
  func.func @transform_12(%arg0: i32) -> (i32, i32) {
    %c0_i32 = arith.constant 0 : i32
    %c0_i32_0 = arith.constant 0 : i32
    %c0_i32_1 = arith.constant 0 : i32
    return %c0_i32, %c0_i32_0 : i32, i32
  }
  func.func @transform_13(%arg0: i32) -> (i32, i32) {
    %c0_i32 = arith.constant 0 : i32
    %c0_i32_0 = arith.constant 0 : i32
    return %arg0, %c0_i32 : i32, i32
  }
}

</mosaic_0001>

<bundles_post_ra>
// kernel: tpu_custom_call.1
= control target key start
LH: loop header
LB: loop body
LE: loop exit
PB: predicated region body
PF: predicated region fallthrough
CT: control target
= control target key end

     0   :  { %s1310_s0 = inlined_call_operand.vmem [shape: f32[16,8], index: 0, kind: input, shape index: {}]   ;;  %s1311_s1 = inlined_call_operand.vmem [shape: f32[8,128], index: 1, kind: input, shape index: {}]   ;;  %s1312_s2 = inlined_call_operand.vmem [shape: f32[1,128], index: 2, kind: input, shape index: {}]   ;;  %s1313_s3 = inlined_call_operand.hbm [shape: bf16[128,128], index: 3, kind: input, shape index: {}]   ;;  %s1314_s4 = inlined_call_operand.vmem [shape: f32[1,128], index: 4, kind: input, shape index: {}]   ;;  %s1315_s5 = inlined_call_operand.hbm [shape: bf16[128,128], index: 5, kind: input, shape index: {}]   ;;  %s1316_s6 = inlined_call_operand.vmem [shape: f32[1,128], index: 6, kind: input, shape index: {}]   ;;  %s1317_s7 = inlined_call_operand.hbm [shape: bf16[128,256], index: 7, kind: input, shape index: {}]   ;;  %s1318_s8 = inlined_call_operand.vmem [shape: f32[1,256], index: 8, kind: input, shape index: {}]   ;;  %s1319_s9 = inlined_call_operand.hbm [shape: bf16[128,128], index: 9, kind: input, shape index: {}]   ;;  %s1320_s10 = inlined_call_operand.vmem [shape: f32[1,128], index: 10, kind: input, shape index: {}]   ;;  %s1321_s11 = inlined_call_operand.vmem [shape: f32[1,128], index: 11, kind: input, shape index: {}]   ;;  %s1322_s12 = inlined_call_operand.<no memory space> [shape: f32[1,1], index: 12, kind: input, shape index: {}]   ;;  %s1323_s13 = inlined_call_operand.hbm [shape: f32[16,128], index: 13, kind: output, shape index: {}]  }
   0x1   :  { %v18_v0 = vstv %s1322_s12 }
   0x2   :  { %19 = vst [vmem:[#allocation2] sm:$0x1] %v18_v0 }
   0x3   :  { %20 = vsyncpa [#allocation4], 0 }
   0x4   :  { %21 = vsyncpa [#allocation7], 0 }
   0x5   :  { %22 = vsyncpa [#allocation10], 0 }
   0x6   :  { %23 = vsyncpa [#allocation5], 0  ;;  %s1126_s27 = smov [#allocation6]   ;;  %s1127_s29 = smov [#allocation3]  }
   0x7   :  { %s49_s28 = sshll.u32 %s1126_s27, 4  ;;  %s35_s30 = sshll.u32 %s1127_s29, 4  ;;  %s50_s28 = int_to_ptr.vmem [resolvable:$true] %s49_s28  ;;  %s36_s30 = int_to_ptr.vmem [resolvable:$true] %s35_s30 }
   0x8   :  { %s1026_s14 = scalar_lea.vmem %s50_s28, 1024  ;;  %p1031_p1 = scmp.lt.s32.totalorder %s50_s28, %s50_s28 }
   0x9   :  { %p1027_p0 = scmp.ne.s32.totalorder %s50_s28, %s1026_s14  ;;  %p1032_p2 = scmp.lt.s32.totalorder %s1026_s14, %s1026_s14 }
   0xb   :  { %p1033_p3 = por %p1032_p2, %p1031_p1 }
   0xd   :  { %p1034_p4 = pnand %p1033_p3, %p1027_p0 }
   0xf   :  { %1037 = shalt.err (!%p1034_p4)
}
  0x10   :  { %s1128_s15 = smov 64   ;;  %s1129_s12 = smov 4  }
  0x11   :  { %55 = dma.hbm_to_vmem [thread:$0]  %s1315_s5, 1024, %s50_s28, [#allocation7], %s1128_s15, %s1128_s15, %s1129_s12  }
  0x12   :  { %s1046_s18 = scalar_lea.vmem %s36_s30, 1024  ;;  %p1051_p6 = scmp.lt.s32.totalorder %s36_s30, %s36_s30 }
  0x13   :  { %p1047_p5 = scmp.ne.s32.totalorder %s36_s30, %s1046_s18  ;;  %p1052_p7 = scmp.lt.s32.totalorder %s1046_s18, %s1046_s18 }
  0x15   :  { %p1053_p8 = por %p1052_p7, %p1051_p6 }
  0x17   :  { %p1054_p9 = pnand %p1053_p8, %p1047_p5 }
  0x19   :  { %1057 = shalt.err (!%p1054_p9)
}
  0x1a   :  { %41 = dma.hbm_to_vmem [thread:$0]  %s1313_s3, 1024, %s36_s30, [#allocation4], %s1128_s15, %s1128_s15, %s1129_s12  }
  0x1b   :  { %s1130_s21 = smov [#allocation8]  }
  0x1c   :  { %s63_s22 = sshll.u32 %s1130_s21, 4  ;;  %s64_s22 = int_to_ptr.vmem [resolvable:$true] %s63_s22 }
  0x1d   :  { %s1066_s23 = scalar_lea.vmem %s64_s22, 2048  ;;  %p1071_p11 = scmp.lt.s32.totalorder %s64_s22, %s64_s22 }
  0x1e   :  { %p1067_p10 = scmp.ne.s32.totalorder %s64_s22, %s1066_s23  ;;  %p1072_p12 = scmp.lt.s32.totalorder %s1066_s23, %s1066_s23 }
  0x20   :  { %p1073_p13 = por %p1072_p12, %p1071_p11 }
  0x22   :  { %p1074_p0 = pnand %p1073_p13, %p1067_p10 }
  0x24   :  { %1077 = shalt.err (!%p1074_p0)
}
  0x25   :  { %s1131_s5 = smov 128   ;;  %s1132_s24 = smov 8  }
  0x26   :  { %69 = dma.hbm_to_vmem [thread:$0]  %s1317_s7, 2048, %s64_s22, [#allocation7], %s1131_s5, %s1131_s5, %s1132_s24  }
  0x27   :  { %s1133_s3 = smov [#allocation9]  }
  0x28   :  { %s77_s27 = sshll.u32 %s1133_s3, 4  ;;  %s78_s27 = int_to_ptr.vmem [resolvable:$true] %s77_s27 }
  0x29   :  { %s1086_s28 = scalar_lea.vmem %s78_s27, 1024  ;;  %p1091_p2 = scmp.lt.s32.totalorder %s78_s27, %s78_s27 }
  0x2a   :  { %p1087_p1 = scmp.ne.s32.totalorder %s78_s27, %s1086_s28  ;;  %p1092_p3 = scmp.lt.s32.totalorder %s1086_s28, %s1086_s28 }
  0x2c   :  { %p1093_p4 = por %p1092_p3, %p1091_p2 }
  0x2e   :  { %p1094_p5 = pnand %p1093_p4, %p1087_p1 }
  0x30   :  { %1097 = shalt.err (!%p1094_p5)
}
  0x31   :  { %83 = dma.hbm_to_vmem [thread:$0]  %s1319_s9, 1024, %s78_s27, [#allocation10], %s1128_s15, %s1128_s15, %s1129_s12  }
  0x32   :  { %1118 = dma.done.wait [#allocation4], 1024  }
  0x33   :  { %1119 = vsyncadd [#allocation4], 4294966272 }
  0x34   :  { %1120 = dma.done.wait [#allocation7], 3072  }
  0x35   :  { %1121 = vsyncadd [#allocation7], 4294964224 }
  0x36   :  { %1122 = dma.done.wait [#allocation10], 1024  }
  0x37   :  { %1123 = vsyncadd [#allocation10], 4294966272  ;;  %v1134_v1 = vmov 0.0   ;;  %vm113_vm0 = vcmask 64512   ;;  %v105_v2 = vld [vmem:[%s1311_s1] sm:$0xff]  ;;  %v104_v4 = vld [vmem:[%s1310_s0 + $0x8] sm:$0xff] }
  0x38   :  { %880 = vmatprep.subr.bf16.mxu1 %v1134_v1  ;;  %v103_v3 = vld [vmem:[%s1310_s0] sm:$0xff]  ;;  %875 = vmatprep.subr.mxu0 %v105_v2  ;;  %v955_v6 = vld [vmem:[#allocation3 + $0x30] sm:$0xff]   ;;  %v956_v7 = vld [vmem:[#allocation3 + $0x28] sm:$0xff]   ;;  %vm1135_vm1 = vmmov 0   ;;  %v1136_v55 = vmov 0  }
  0x39   :  { %877 = vmatprep.mubr.msk.f32.mxu0 %vm113_vm0, %v103_v3  ;;  %v954_v5 = vld [vmem:[#allocation3 + $0x38] sm:$0xff]   ;;  %876 = vmatpush3.msra.mxu0 %v105_v2  ;;  %v957_v8 = vld [vmem:[#allocation3 + $0x20] sm:$0xff]   ;;  %v959_v10 = vld [vmem:[#allocation3 + $0x10] sm:$0xff]  }
  0x3a   :  { %878 = vmatmul.mubr.msk.f32.vlgmr.msra.gmra.mxu0 %vm113_vm0, %v104_v4  ;;  %881 = vmatpush3.bf16.msra.mxu1 %v954_v5  ;;  %v958_v9 = vld [vmem:[#allocation3 + $0x18] sm:$0xff]   ;;  %v960_v11 = vld [vmem:[#allocation3 + $0x8] sm:$0xff]   ;;  %v961_v12 = vld [vmem:[#allocation3] sm:$0xff]  }
  0x3b   :  { %882 = vmatprep.subr.bf16.mxu1 %v1134_v1  ;;  %900 = vmatprep.subr.bf16.mxu0 %v1134_v1  ;;  %v962_v13 = vld [vmem:[#allocation6 + $0x38] sm:$0xff]   ;;  %v963_v14 = vld [vmem:[#allocation6 + $0x30] sm:$0xff]   ;;  %v964_v15 = vld [vmem:[#allocation6 + $0x28] sm:$0xff]  }
  0x3c   :  { %896 = vmatprep.mubr.msk.bf16.mxu1 %vm1135_vm1, %v1134_v1  ;;  %916 = vmatprep.mubr.msk.bf16.mxu0 %vm1135_vm1, %v1134_v1  ;;  %v965_v16 = vld [vmem:[#allocation6 + $0x20] sm:$0xff]   ;;  %v966_v17 = vld [vmem:[#allocation6 + $0x18] sm:$0xff]   ;;  %v967_v26 = vld [vmem:[#allocation6 + $0x10] sm:$0xff]  }
  0x3d   :  { %901 = vmatpush3.bf16.msra.mxu0 %v962_v13  ;;  %v797_v18 = vld [vmem:[%s1312_s2] ss:$0 sm:$0xff]  ;;  %v968_v27 = vld [vmem:[#allocation6 + $0x8] sm:$0xff]   ;;  %v969_v28 = vld [vmem:[#allocation6] sm:$0xff]   ;;  %953 = vset.pattern.permute.xlu1 %v1136_v55 }
  0x3e   :  { %883 = vmatpush3.bf16.msra.mxu1 %v955_v6  ;;  %902 = vmatprep.subr.bf16.mxu0 %v1134_v1  ;;  %v970_v29 = vld [vmem:[#allocation8 + $0x70] ss:$8 sps:$4 sm:$0xff]   ;;  %v972_v30 = vld [vmem:[#allocation8 + $0x74] ss:$8 sps:$4 sm:$0xff]   ;;  %v975_v31 = vld [vmem:[#allocation8 + $0x64] ss:$8 sps:$4 sm:$0xff]  }
  0x3f   :  { %884 = vmatprep.subr.bf16.mxu1 %v1134_v1  ;;  %v973_v32 = vld [vmem:[#allocation8 + $0x60] ss:$8 sps:$4 sm:$0xff]   ;;  %v978_v33 = vld [vmem:[#allocation8 + $0x54] ss:$8 sps:$4 sm:$0xff]   ;;  %v976_v34 = vld [vmem:[#allocation8 + $0x50] ss:$8 sps:$4 sm:$0xff]   ;;  %952 = vset.pattern.permute.xlu0 %v1136_v55 }
  0x40   :  { %v981_v35 = vld [vmem:[#allocation8 + $0x44] ss:$8 sps:$4 sm:$0xff]   ;;  %v979_v36 = vld [vmem:[#allocation8 + $0x40] ss:$8 sps:$4 sm:$0xff]   ;;  %v984_v37 = vld [vmem:[#allocation8 + $0x34] ss:$8 sps:$4 sm:$0xff]  }
  0x41   :  { %903 = vmatpush3.bf16.msra.mxu0 %v963_v14  ;;  %v982_v38 = vld [vmem:[#allocation8 + $0x30] ss:$8 sps:$4 sm:$0xff]   ;;  %v987_v39 = vld [vmem:[#allocation8 + $0x24] ss:$8 sps:$4 sm:$0xff]   ;;  %v985_v40 = vld [vmem:[#allocation8 + $0x20] ss:$8 sps:$4 sm:$0xff]  }
  0x42   :  { %885 = vmatpush3.bf16.msra.mxu1 %v956_v7  ;;  %904 = vmatprep.subr.bf16.mxu0 %v1134_v1  ;;  %v800_v41 = vld [vmem:[%s1314_s4] ss:$0 sm:$0xff]  ;;  %v988_v52 = vld [vmem:[#allocation8 + $0x10] ss:$8 sps:$4 sm:$0xff]   ;;  %v993_v53 = vld [vmem:[#allocation8 + $0x4] ss:$8 sps:$4 sm:$0xff]  }
  0x43   :  { %886 = vmatprep.subr.bf16.mxu1 %v1134_v1  ;;  %v990_v51 = vld [vmem:[#allocation8 + $0x14] ss:$8 sps:$4 sm:$0xff]   ;;  %v991_v54 = vld [vmem:[#allocation8] ss:$8 sps:$4 sm:$0xff]  }
  0x44   :  { %v994_v56 = vld [vmem:[#allocation9 + $0x38] sm:$0xff]   ;;  %v995_v57 = vld [vmem:[#allocation9 + $0x30] sm:$0xff]   ;;  %v996_v58 = vld [vmem:[#allocation9 + $0x28] sm:$0xff]  }
  0x45   :  { %905 = vmatpush3.bf16.msra.mxu0 %v964_v15  ;;  %v997_v59 = vld [vmem:[#allocation9 + $0x20] sm:$0xff]   ;;  %v998_v60 = vld [vmem:[#allocation9 + $0x18] sm:$0xff]  }
  0x46   :  { %887 = vmatpush3.bf16.msra.mxu1 %v957_v8  ;;  %906 = vmatprep.subr.bf16.mxu0 %v1134_v1  ;;  %v809_v61 = vld [vmem:[%s1316_s6] ss:$0 sm:$0xff]  ;;  %v999_v8 = vld [vmem:[#allocation9 + $0x10] sm:$0xff]  }
  0x47   :  { %888 = vmatprep.subr.bf16.mxu1 %v1134_v1  ;;  %v444_v15 = vld [vmem:[%s1318_s8] sm:$0x3] }
  0x49   :  { %907 = vmatpush3.bf16.msra.mxu0 %v965_v16 }
  0x4a   :  { %889 = vmatpush3.bf16.msra.mxu1 %v958_v9  ;;  %908 = vmatprep.subr.bf16.mxu0 %v1134_v1  ;;  %v1000_v9 = vld [vmem:[#allocation9 + $0x8] sm:$0xff]  }
  0x4b   :  { %890 = vmatprep.subr.bf16.mxu1 %v1134_v1 }
  0x4d   :  { %909 = vmatpush3.bf16.msra.mxu0 %v966_v17 }
  0x4e   :  { %891 = vmatpush3.bf16.msra.mxu1 %v959_v10  ;;  %910 = vmatprep.subr.bf16.mxu0 %v1134_v1  ;;  %v1001_v10 = vld [vmem:[#allocation9] sm:$0xff]  }
  0x4f   :  { %892 = vmatprep.subr.bf16.mxu1 %v1134_v1 }
  0x51   :  { %911 = vmatpush3.bf16.msra.mxu0 %v967_v26 }
  0x52   :  { %893 = vmatpush3.bf16.msra.mxu1 %v960_v11  ;;  %912 = vmatprep.subr.bf16.mxu0 %v1134_v1  ;;  %v446_v11 = vlaneseq }
  0x53   :  { %894 = vmatprep.subr.bf16.mxu1 %v1134_v1 }
  0x55   :  { %913 = vmatpush3.bf16.msra.mxu0 %v968_v27 }
  0x56   :  { %895 = vmatpush3.bf16.msra.mxu1 %v961_v12  ;;  %914 = vmatprep.subr.bf16.mxu0 %v1134_v1  ;;  %v447_v12 = vshrl.u32 %v446_v11, 7 }
  0x57   :  { %536 = vmatprep.subr.bf16.mxu1 %v972_v30 }
  0x58   :  { %v448_v13 = vsub.s32 0, %v447_v12  ;;  %v452_v14 = vsub.s32 1, %v447_v12 }
  0x59   :  { %915 = vmatpush3.bf16.msra.mxu0 %v969_v28 }
  0x5a   :  { %920 = vmatprep.subr.bf16.mxu0 %v1134_v1  ;;  %v449_v16 = vrot.slane %v444_v15, %v448_v13  ;;  %v453_v17 = vrot.slane %v444_v15, %v452_v14 }
  0xfa   :  { %v879_v19 = vpop.f32.mrf.mxu0 }
  0xfb   :  { %v192_v20 = vadd.f32 %v879_v19, %v797_v18 }
  0xfc   :  { %v186_v21 = vpop.f32.mrf.mxu0 }
  0xfd   :  { %v187_v22 = vadd.f32 %v797_v18, %v186_v21  ;;  %v196_v23 = vmax.f32 %v192_v20, 0.0 }
  0xff   :  { %v195_v24 = vmax.f32 %v187_v22, 0.0 }
 0x101   :  { %v197_v25 = vpack.c.bf16 %v196_v23, %v195_v24 }
 0x103   :  { %897 = vmatmul.mubr.bf16.vlgmr.msra.gmra.mxu1 %v197_v25 }
 0x104   :  { %537 = vmatpush1.bf16.msra.mxu1 %v970_v29  ;;  %568 = vmatprep.mubr.bf16.mxu1 %v1136_v55 }
 0x105   :  { %538 = vmatprep.subr.bf16.mxu1 %v975_v31 }
 0x108   :  { %539 = vmatpush1.bf16.msra.mxu1 %v973_v32 }
 0x109   :  { %540 = vmatprep.subr.bf16.mxu1 %v978_v33  ;;  %v1289_v33 = vand.u32 127, %v446_v11 }
 0x10b   :  { %vm720_vm2 = vcmp.lt.s32.totalorder %v1289_v33, 4  ;;  %vm721_vm5 = vcmp.eq.s32.totalorder %v1289_v33, 4 }
 0x10c   :  { %541 = vmatpush1.bf16.msra.mxu1 %v976_v34  ;;  %v834_v34 = vld [vmem:[%s1320_s10] ss:$0 sm:$0xff]  ;;  %s1137_s10 = smov [#allocation11]  }
 0x10d   :  { %542 = vmatprep.subr.bf16.mxu1 %v981_v35 }
 0x110   :  { %543 = vmatpush1.bf16.msra.mxu1 %v979_v36 }
 0x111   :  { %544 = vmatprep.subr.bf16.mxu1 %v984_v37 }
 0x114   :  { %545 = vmatpush1.bf16.msra.mxu1 %v982_v38 }
 0x115   :  { %546 = vmatprep.subr.bf16.mxu1 %v987_v39 }
 0x118   :  { %547 = vmatpush1.bf16.msra.mxu1 %v985_v40 }
 0x119   :  { %548 = vmatprep.subr.bf16.mxu1 %v990_v51 }
 0x11c   :  { %549 = vmatpush1.bf16.msra.mxu1 %v988_v52 }
 0x11d   :  { %550 = vmatprep.subr.bf16.mxu1 %v993_v53 }
 0x120   :  { %551 = vmatpush1.bf16.msra.mxu1 %v991_v54 }
 0x1c3   :  { %v303_v42 = vpop.f32.mrf.mxu1 }
 0x1c4   :  { %v304_v44 = vadd.f32 %v800_v41, %v303_v42 }
 0x1c5   :  { %v898_v43 = vpop.f32.mrf.mxu1 }
 0x1c6   :  { %v310_v48 = vmax.f32 %v304_v44, 0.0 }
 0x1c7   :  { %v306_v45 = vpop.f32.mrf.mxu1 }
 0x1c8   :  { %v307_v46 = vadd.f32 %v800_v41, %v306_v45  ;;  %v844_v45 = vld [vmem:[#allocation2] ss:$0 sm:$0xff] }
 0x1c9   :  { %v899_v47 = vpop.f32.mrf.mxu1 }
 0x1ca   :  { %v311_v49 = vmax.f32 %v307_v46, 0.0 }
 0x1cc   :  { %v312_v50 = vpack.c.bf16 %v311_v49, %v310_v48 }
 0x1ce   :  { %917 = vmatmul.mubr.bf16.vlgmr.msra.gmra.mxu0 %v312_v50 }
 0x1cf   :  { %936 = vmatprep.mubr.msk.bf16.mxu0 %vm1135_vm1, %v1134_v1  ;;  %921 = vmatpush3.bf16.msra.mxu0 %v994_v56 }
 0x1d0   :  { %922 = vmatprep.subr.bf16.mxu0 %v1134_v1 }
 0x1d3   :  { %923 = vmatpush3.bf16.msra.mxu0 %v995_v57 }
 0x1d4   :  { %924 = vmatprep.subr.bf16.mxu0 %v1134_v1 }
 0x1d7   :  { %925 = vmatpush3.bf16.msra.mxu0 %v996_v58 }
 0x1d8   :  { %926 = vmatprep.subr.bf16.mxu0 %v1134_v1 }
 0x1db   :  { %927 = vmatpush3.bf16.msra.mxu0 %v997_v59 }
 0x1dc   :  { %928 = vmatprep.subr.bf16.mxu0 %v1134_v1 }
 0x1df   :  { %929 = vmatpush3.bf16.msra.mxu0 %v998_v60 }
 0x1e0   :  { %930 = vmatprep.subr.bf16.mxu0 %v1134_v1 }
 0x1e3   :  { %931 = vmatpush3.bf16.msra.mxu0 %v999_v8 }
 0x1e4   :  { %932 = vmatprep.subr.bf16.mxu0 %v1134_v1 }
 0x1e7   :  { %933 = vmatpush3.bf16.msra.mxu0 %v1000_v9 }
 0x1e8   :  { %934 = vmatprep.subr.bf16.mxu0 %v1134_v1  ;;  %v843_v1 = vld [vmem:[%s1321_s11] ss:$0 sm:$0xff]  ;;  %s783_s11 = sshll.u32 %s1137_s10, 4  ;;  %s784_s11 = int_to_ptr.vmem [resolvable:$true] %s783_s11 }
 0x1e9   :  { %s1098_s23 = scalar_lea.vmem %s784_s11, 256  ;;  %p1103_p7 = scmp.lt.s32.totalorder %s784_s11, %s784_s11 }
 0x1ea   :  { %p1099_p6 = scmp.ne.s32.totalorder %s784_s11, %s1098_s23  ;;  %p1104_p8 = scmp.lt.s32.totalorder %s1098_s23, %s1098_s23 }
 0x1eb   :  { %935 = vmatpush3.bf16.msra.mxu0 %v1001_v10 }
 0x1ec   :  { %p1105_p9 = por %p1104_p8, %p1103_p7 }
 0x1ee   :  { %p1106_p10 = pnand %p1105_p9, %p1099_p6 }
 0x28e   :  { %v418_v62 = vpop.f32.mrf.mxu0 }
 0x28f   :  { %v419_v0 = vadd.f32 %v809_v61, %v418_v62 }
 0x290   :  { %v918_v63 = vpop.f32.mrf.mxu0 }
 0x291   :  { %v425_v5 = vmax.f32 %v419_v0, 0.0 }
 0x292   :  { %v421_v2 = vpop.f32.mrf.mxu0 }
 0x293   :  { %v422_v3 = vadd.f32 %v809_v61, %v421_v2 }
 0x294   :  { %v919_v4 = vpop.f32.mrf.mxu0 }
 0x295   :  { %v426_v6 = vmax.f32 %v422_v3, 0.0 }
 0x297   :  { %v427_v7 = vpack.c.bf16 %v426_v6, %v425_v5 }
 0x299   :  { %569 = vmatmul.mubr.bf16.vlgmr.msra.gmra.mxu1 %v427_v7 }
 0x359   :  { %v570_v18 = vpop.f32.mrf.mxu1 }
 0x35a   :  { %v571_v20 = vadd.f32 %v570_v18, %v449_v16 }
 0x35b   :  { %v572_v19 = vpop.f32.mrf.mxu1 }
 0x35c   :  { %v573_v21 = vadd.f32 %v572_v19, %v453_v17  ;;  %v579_v26 = vmax.f32 %v571_v20, 0.0 }
 0x35d   :  { %v574_v22 = vpop.f32.mrf.mxu1 }
 0x35e   :  { %v580_v23 = vmax.f32 %v573_v21, 0.0  ;;  %v575_v24 = vadd.f32 %v574_v22, %v449_v16 }
 0x35f   :  { %v576_v25 = vpop.f32.mrf.mxu1 }
 0x360   :  { %v581_v27 = vmax.f32 %v575_v24, 0.0  ;;  %v577_v28 = vadd.f32 %v576_v25, %v453_v17  ;;  %v703_v29 = vmul.f32 %v843_v1, %v580_v23 }
 0x362   :  { %v583_v30 = vpack.c.bf16 %v581_v27, %v579_v26  ;;  %v582_v31 = vmax.f32 %v577_v28, 0.0  ;;  %705 = vadd.xlane.f32.xlu0 %v703_v29 }
 0x364   :  { %937 = vmatmul.mubr.bf16.vlgmr.msra.gmra.mxu0 %v583_v30  ;;  %v704_v32 = vmul.f32 %v843_v1, %v582_v31 }
 0x366   :  { %707 = vadd.xlane.f32.xlu0 %v704_v32 }
 0x3eb   :  { %v706_v43 = vpop.xlane.xlu0 %705 }
 0x3ec   :  { %v716_v47 = vadd.f32 %v844_v45, %v706_v43 }
 0x3ee   :  { %v744_v49 = vand.u32 2147483647, %v716_v47  ;;  %vm756_vm4 = vcmp.ge.f32.partialorder %v716_v47, 0.0 }
 0x3ef   :  { %v708_v44 = vpop.xlane.xlu0 %707 }
 0x3f0   :  { %v717_v46 = vadd.f32 %v844_v45, %v708_v44  ;;  %v746_v51 = vsub.f32 0.0, %v744_v49 }
 0x3f2   :  { %v745_v48 = vand.u32 2147483647, %v717_v46  ;;  %v748_v53 = vmul.f32 1.442695, %v746_v51  ;;  %vm757_vm3 = vcmp.ge.f32.partialorder %v717_v46, 0.0 }
 0x3f4   :  { %v747_v50 = vsub.f32 0.0, %v745_v48 }
 0x3f6   :  { %v750_v52 = vmul.f32 1.442695, %v747_v50 }
 0x3f8   :  { %1002 = vpow2.f32 %v750_v52 }
 0x3f9   :  { %1004 = vpow2.f32 %v748_v53 }
 0x405   :  { %v1003_v60 = vpop.eup %1002 }
 0x406   :  { %v1005_v61 = vpop.eup %1004  ;;  %v753_v62 = vadd.f32 1.0, %v1003_v60 }
 0x407   :  { %v752_v63 = vadd.f32 1.0, %v1005_v61 }
 0x424   :  { %v689_v35 = vpop.f32.mrf.mxu0 }
 0x425   :  { %v690_v36 = vadd.f32 %v834_v34, %v689_v35 }
 0x426   :  { %v938_v37 = vpop.f32.mrf.mxu0 }
 0x427   :  { %v722_v38 = vsel %vm720_vm2, %v690_v36, -1e+30 }
 0x428   :  { %724 = vmax.xlane.f32.xlu1 %v722_v38  ;;  %v692_v39 = vpop.f32.mrf.mxu0 }
 0x429   :  { %v693_v40 = vadd.f32 %v834_v34, %v692_v39 }
 0x42a   :  { %v939_v41 = vpop.f32.mrf.mxu0 }
 0x42b   :  { %v723_v42 = vsel %vm720_vm2, %v693_v40, -1e+30 }
 0x42c   :  { %726 = vmax.xlane.f32.xlu1 %v723_v42 }
 0x4b1   :  { %v725_v54 = vpop.xlane.xlu1 %724 }
 0x4b2   :  { %v728_v55 = vsub.f32 %v722_v38, %v725_v54 }
 0x4b4   :  { %v730_v56 = vmul.f32 1.442695, %v728_v55 }
 0x4b5   :  { %v727_v57 = vpop.xlane.xlu1 %726 }
 0x4b6   :  { %1006 = vpow2.f32 %v730_v56  ;;  %v729_v58 = vsub.f32 %v723_v42, %v727_v57 }
 0x4b8   :  { %v732_v59 = vmul.f32 1.442695, %v729_v58 }
 0x4ba   :  { %1008 = vpow2.f32 %v732_v59 }
 0x4bb   :  { %1010 = vrcp.f32 %v753_v62 }
 0x4bc   :  { %1012 = vrcp.f32 %v752_v63 }
 0x4c3   :  { %v1007_v0 = vpop.eup %1006 }
 0x4c4   :  { %734 = vadd.xlane.f32.xlu0 %v1007_v0 }
 0x4c7   :  { %v1009_v2 = vpop.eup %1008 }
 0x4c8   :  { %736 = vadd.xlane.f32.xlu1 %v1009_v2  ;;  %v1011_v3 = vpop.eup %1010 }
 0x4c9   :  { %v1013_v4 = vpop.eup %1012  ;;  %v759_v5 = vmul.f32 %v1011_v3, %v1003_v60 }
 0x4ca   :  { %v758_v6 = vmul.f32 %v1013_v4, %v1005_v61 }
 0x4cb   :  { %v761_v7 = vsel %vm757_vm3, %v1011_v3, %v759_v5 }
 0x4cc   :  { %v760_v8 = vsel %vm756_vm4, %v1013_v4, %v758_v6 }
 0x4d9   :  { %769 = vperm.xlu1 %953, %v761_v7  }
 0x4da   :  { %764 = vperm.xlu0 %952, %v760_v8  }
 0x54d   :  { %v735_v9 = vpop.xlane.xlu0 %734 }
 0x54e   :  { %1014 = vrcp.f32 %v735_v9 }
 0x551   :  { %v737_v10 = vpop.xlane.xlu1 %736 }
 0x552   :  { %1016 = vrcp.f32 %v737_v10 }
 0x555   :  { %v765_v11 = vpop.permute.xlu0 %764  ;;  %v770_v16 = vpop.permute.xlu1 %769 }
 0x556   :  { %v772_v14 = vsel %vm721_vm5, %v765_v11, 0.0  ;;  %v773_v19 = vsel %vm721_vm5, %v770_v16, 0.0 }
 0x55b   :  { %v1015_v12 = vpop.eup %1014 }
 0x55c   :  { %v742_v13 = vmul.f32 %v1015_v12, %v1007_v0 }
 0x55e   :  { %v774_v15 = vsel %vm720_vm2, %v742_v13, %v772_v14 }
 0x55f   :  { %v1017_v17 = vpop.eup %1016  ;;  %776 = vst [vmem:[#allocation11] sm:$0xff] %v774_v15 }
 0x560   :  { %v743_v18 = vmul.f32 %v1017_v17, %v1009_v2 }
 0x562   :  { %v775_v20 = vsel %vm720_vm2, %v743_v18, %v773_v19 }
 0x563   :  { %777 = vst [vmem:[#allocation11 + $0x8] sm:$0xff] %v775_v20 }
 0x564   :  { %1109 = shalt.err (!%p1106_p10)
}
 0x565   :  { %789 = dma.vmem_to_hbm [thread:$0]  %s784_s11, 256, %s1323_s13, [#allocation5], %s1131_s5, %s1131_s5, %s1132_s24  }
 0x566   :  { %1124 = dma.done.wait [#allocation5], 256  }
 0x567   :  { %1125 = vsyncadd [#allocation5], 4294967040 }
 0x568   :  { %793 = vsyncpa [#allocation4], 1 }
 0x569   :  { %794 = vsyncpa [#allocation7], 1 }
 0x56a   :  { %795 = vsyncpa [#allocation10], 1 }
 0x56b   :  { %796 = vsyncpa [#allocation5], 1 }

// kernel: tpu_custom_call.1
= control target key start
LH: loop header
LB: loop body
LE: loop exit
PB: predicated region body
PF: predicated region fallthrough
CT: control target
= control target key end

     0   :  { %s1310_s0 = inlined_call_operand.vmem [shape: f32[16,8], index: 0, kind: input, shape index: {}]   ;;  %s1311_s1 = inlined_call_operand.vmem [shape: f32[8,128], index: 1, kind: input, shape index: {}]   ;;  %s1312_s2 = inlined_call_operand.vmem [shape: f32[1,128], index: 2, kind: input, shape index: {}]   ;;  %s1313_s3 = inlined_call_operand.hbm [shape: bf16[128,128], index: 3, kind: input, shape index: {}]   ;;  %s1314_s4 = inlined_call_operand.vmem [shape: f32[1,128], index: 4, kind: input, shape index: {}]   ;;  %s1315_s5 = inlined_call_operand.hbm [shape: bf16[128,128], index: 5, kind: input, shape index: {}]   ;;  %s1316_s6 = inlined_call_operand.vmem [shape: f32[1,128], index: 6, kind: input, shape index: {}]   ;;  %s1317_s7 = inlined_call_operand.hbm [shape: bf16[128,256], index: 7, kind: input, shape index: {}]   ;;  %s1318_s8 = inlined_call_operand.vmem [shape: f32[1,256], index: 8, kind: input, shape index: {}]   ;;  %s1319_s9 = inlined_call_operand.hbm [shape: bf16[128,128], index: 9, kind: input, shape index: {}]   ;;  %s1320_s10 = inlined_call_operand.vmem [shape: f32[1,128], index: 10, kind: input, shape index: {}]   ;;  %s1321_s11 = inlined_call_operand.vmem [shape: f32[1,128], index: 11, kind: input, shape index: {}]   ;;  %s1322_s12 = inlined_call_operand.<no memory space> [shape: f32[1,1], index: 12, kind: input, shape index: {}]   ;;  %s1323_s13 = inlined_call_operand.hbm [shape: f32[16,128], index: 13, kind: output, shape index: {}]  }
   0x1   :  { %v18_v0 = vstv %s1322_s12 }
   0x2   :  { %19 = vst [vmem:[#allocation2] sm:$0x1] %v18_v0 }
   0x3   :  { %20 = vsyncpa [#allocation4], 0 }
   0x4   :  { %21 = vsyncpa [#allocation7], 0 }
   0x5   :  { %22 = vsyncpa [#allocation10], 0 }
   0x6   :  { %23 = vsyncpa [#allocation5], 0  ;;  %s1126_s27 = smov [#allocation6]   ;;  %s1127_s29 = smov [#allocation3]  }
   0x7   :  { %s49_s28 = sshll.u32 %s1126_s27, 4  ;;  %s35_s30 = sshll.u32 %s1127_s29, 4  ;;  %s50_s28 = int_to_ptr.vmem [resolvable:$true] %s49_s28  ;;  %s36_s30 = int_to_ptr.vmem [resolvable:$true] %s35_s30 }
   0x8   :  { %s1026_s14 = scalar_lea.vmem %s50_s28, 1024  ;;  %p1031_p1 = scmp.lt.s32.totalorder %s50_s28, %s50_s28 }
   0x9   :  { %p1027_p0 = scmp.ne.s32.totalorder %s50_s28, %s1026_s14  ;;  %p1032_p2 = scmp.lt.s32.totalorder %s1026_s14, %s1026_s14 }
   0xb   :  { %p1033_p3 = por %p1032_p2, %p1031_p1 }
   0xd   :  { %p1034_p4 = pnand %p1033_p3, %p1027_p0 }
   0xf   :  { %1037 = shalt.err (!%p1034_p4)
}
  0x10   :  { %s1128_s15 = smov 64   ;;  %s1129_s12 = smov 4  }
  0x11   :  { %55 = dma.hbm_to_vmem [thread:$0]  %s1315_s5, 1024, %s50_s28, [#allocation7], %s1128_s15, %s1128_s15, %s1129_s12  }
  0x12   :  { %s1046_s18 = scalar_lea.vmem %s36_s30, 1024  ;;  %p1051_p6 = scmp.lt.s32.totalorder %s36_s30, %s36_s30 }
  0x13   :  { %p1047_p5 = scmp.ne.s32.totalorder %s36_s30, %s1046_s18  ;;  %p1052_p7 = scmp.lt.s32.totalorder %s1046_s18, %s1046_s18 }
  0x15   :  { %p1053_p8 = por %p1052_p7, %p1051_p6 }
  0x17   :  { %p1054_p9 = pnand %p1053_p8, %p1047_p5 }
  0x19   :  { %1057 = shalt.err (!%p1054_p9)
}
  0x1a   :  { %41 = dma.hbm_to_vmem [thread:$0]  %s1313_s3, 1024, %s36_s30, [#allocation4], %s1128_s15, %s1128_s15, %s1129_s12  }
  0x1b   :  { %s1130_s21 = smov [#allocation8]  }
  0x1c   :  { %s63_s22 = sshll.u32 %s1130_s21, 4  ;;  %s64_s22 = int_to_ptr.vmem [resolvable:$true] %s63_s22 }
  0x1d   :  { %s1066_s23 = scalar_lea.vmem %s64_s22, 2048  ;;  %p1071_p11 = scmp.lt.s32.totalorder %s64_s22, %s64_s22 }
  0x1e   :  { %p1067_p10 = scmp.ne.s32.totalorder %s64_s22, %s1066_s23  ;;  %p1072_p12 = scmp.lt.s32.totalorder %s1066_s23, %s1066_s23 }
  0x20   :  { %p1073_p13 = por %p1072_p12, %p1071_p11 }
  0x22   :  { %p1074_p0 = pnand %p1073_p13, %p1067_p10 }
  0x24   :  { %1077 = shalt.err (!%p1074_p0)
}
  0x25   :  { %s1131_s5 = smov 128   ;;  %s1132_s24 = smov 8  }
  0x26   :  { %69 = dma.hbm_to_vmem [thread:$0]  %s1317_s7, 2048, %s64_s22, [#allocation7], %s1131_s5, %s1131_s5, %s1132_s24  }
  0x27   :  { %s1133_s3 = smov [#allocation9]  }
  0x28   :  { %s77_s27 = sshll.u32 %s1133_s3, 4  ;;  %s78_s27 = int_to_ptr.vmem [resolvable:$true] %s77_s27 }
  0x29   :  { %s1086_s28 = scalar_lea.vmem %s78_s27, 1024  ;;  %p1091_p2 = scmp.lt.s32.totalorder %s78_s27, %s78_s27 }
  0x2a   :  { %p1087_p1 = scmp.ne.s32.totalorder %s78_s27, %s1086_s28  ;;  %p1092_p3 = scmp.lt.s32.totalorder %s1086_s28, %s1086_s28 }
  0x2c   :  { %p1093_p4 = por %p1092_p3, %p1091_p2 }
  0x2e   :  { %p1094_p5 = pnand %p1093_p4, %p1087_p1 }
  0x30   :  { %1097 = shalt.err (!%p1094_p5)
}
  0x31   :  { %83 = dma.hbm_to_vmem [thread:$0]  %s1319_s9, 1024, %s78_s27, [#allocation10], %s1128_s15, %s1128_s15, %s1129_s12  }
  0x32   :  { %1118 = dma.done.wait [#allocation4], 1024  }
  0x33   :  { %1119 = vsyncadd [#allocation4], 4294966272 }
  0x34   :  { %1120 = dma.done.wait [#allocation7], 3072  }
  0x35   :  { %1121 = vsyncadd [#allocation7], 4294964224 }
  0x36   :  { %1122 = dma.done.wait [#allocation10], 1024  }
  0x37   :  { %1123 = vsyncadd [#allocation10], 4294966272  ;;  %v1134_v1 = vmov 0.0   ;;  %vm113_vm0 = vcmask 64512   ;;  %v105_v2 = vld [vmem:[%s1311_s1] sm:$0xff]  ;;  %v104_v4 = vld [vmem:[%s1310_s0 + $0x8] sm:$0xff] }
  0x38   :  { %880 = vmatprep.subr.bf16.mxu1 %v1134_v1  ;;  %v103_v3 = vld [vmem:[%s1310_s0] sm:$0xff]  ;;  %875 = vmatprep.subr.mxu0 %v105_v2  ;;  %v955_v6 = vld [vmem:[#allocation3 + $0x30] sm:$0xff]   ;;  %v956_v7 = vld [vmem:[#allocation3 + $0x28] sm:$0xff]   ;;  %vm1135_vm1 = vmmov 0   ;;  %v1136_v55 = vmov 0  }
  0x39   :  { %877 = vmatprep.mubr.msk.f32.mxu0 %vm113_vm0, %v103_v3  ;;  %v954_v5 = vld [vmem:[#allocation3 + $0x38] sm:$0xff]   ;;  %876 = vmatpush3.msra.mxu0 %v105_v2  ;;  %v957_v8 = vld [vmem:[#allocation3 + $0x20] sm:$0xff]   ;;  %v959_v10 = vld [vmem:[#allocation3 + $0x10] sm:$0xff]  }
  0x3a   :  { %878 = vmatmul.mubr.msk.f32.vlgmr.msra.gmra.mxu0 %vm113_vm0, %v104_v4  ;;  %881 = vmatpush3.bf16.msra.mxu1 %v954_v5  ;;  %v958_v9 = vld [vmem:[#allocation3 + $0x18] sm:$0xff]   ;;  %v960_v11 = vld [vmem:[#allocation3 + $0x8] sm:$0xff]   ;;  %v961_v12 = vld [vmem:[#allocation3] sm:$0xff]  }
  0x3b   :  { %882 = vmatprep.subr.bf16.mxu1 %v1134_v1  ;;  %900 = vmatprep.subr.bf16.mxu0 %v1134_v1  ;;  %v962_v13 = vld [vmem:[#allocation6 + $0x38] sm:$0xff]   ;;  %v963_v14 = vld [vmem:[#allocation6 + $0x30] sm:$0xff]   ;;  %v964_v15 = vld [vmem:[#allocation6 + $0x28] sm:$0xff]  }
  0x3c   :  { %896 = vmatprep.mubr.msk.bf16.mxu1 %vm1135_vm1, %v1134_v1  ;;  %916 = vmatprep.mubr.msk.bf16.mxu0 %vm1135_vm1, %v1134_v1  ;;  %v965_v16 = vld [vmem:[#allocation6 + $0x20] sm:$0xff]   ;;  %v966_v17 = vld [vmem:[#allocation6 + $0x18] sm:$0xff]   ;;  %v967_v26 = vld [vmem:[#allocation6 + $0x10] sm:$0xff]  }
  0x3d   :  { %901 = vmatpush3.bf16.msra.mxu0 %v962_v13  ;;  %v797_v18 = vld [vmem:[%s1312_s2] ss:$0 sm:$0xff]  ;;  %v968_v27 = vld [vmem:[#allocation6 + $0x8] sm:$0xff]   ;;  %v969_v28 = vld [vmem:[#allocation6] sm:$0xff]   ;;  %953 = vset.pattern.permute.xlu1 %v1136_v55 }
  0x3e   :  { %883 = vmatpush3.bf16.msra.mxu1 %v955_v6  ;;  %902 = vmatprep.subr.bf16.mxu0 %v1134_v1  ;;  %v970_v29 = vld [vmem:[#allocation8 + $0x70] ss:$8 sps:$4 sm:$0xff]   ;;  %v972_v30 = vld [vmem:[#allocation8 + $0x74] ss:$8 sps:$4 sm:$0xff]   ;;  %v975_v31 = vld [vmem:[#allocation8 + $0x64] ss:$8 sps:$4 sm:$0xff]  }
  0x3f   :  { %884 = vmatprep.subr.bf16.mxu1 %v1134_v1  ;;  %v973_v32 = vld [vmem:[#allocation8 + $0x60] ss:$8 sps:$4 sm:$0xff]   ;;  %v978_v33 = vld [vmem:[#allocation8 + $0x54] ss:$8 sps:$4 sm:$0xff]   ;;  %v976_v34 = vld [vmem:[#allocation8 + $0x50] ss:$8 sps:$4 sm:$0xff]   ;;  %952 = vset.pattern.permute.xlu0 %v1136_v55 }
  0x40   :  { %v981_v35 = vld [vmem:[#allocation8 + $0x44] ss:$8 sps:$4 sm:$0xff]   ;;  %v979_v36 = vld [vmem:[#allocation8 + $0x40] ss:$8 sps:$4 sm:$0xff]   ;;  %v984_v37 = vld [vmem:[#allocation8 + $0x34] ss:$8 sps:$4 sm:$0xff]  }
  0x41   :  { %903 = vmatpush3.bf16.msra.mxu0 %v963_v14  ;;  %v982_v38 = vld [vmem:[#allocation8 + $0x30] ss:$8 sps:$4 sm:$0xff]   ;;  %v987_v39 = vld [vmem:[#allocation8 + $0x24] ss:$8 sps:$4 sm:$0xff]   ;;  %v985_v40 = vld [vmem:[#allocation8 + $0x20] ss:$8 sps:$4 sm:$0xff]  }
  0x42   :  { %885 = vmatpush3.bf16.msra.mxu1 %v956_v7  ;;  %904 = vmatprep.subr.bf16.mxu0 %v1134_v1  ;;  %v800_v41 = vld [vmem:[%s1314_s4] ss:$0 sm:$0xff]  ;;  %v988_v52 = vld [vmem:[#allocation8 + $0x10] ss:$8 sps:$4 sm:$0xff]   ;;  %v993_v53 = vld [vmem:[#allocation8 + $0x4] ss:$8 sps:$4 sm:$0xff]  }
  0x43   :  { %886 = vmatprep.subr.bf16.mxu1 %v1134_v1  ;;  %v990_v51 = vld [vmem:[#allocation8 + $0x14] ss:$8 sps:$4 sm:$0xff]   ;;  %v991_v54 = vld [vmem:[#allocation8] ss:$8 sps:$4 sm:$0xff]  }
  0x44   :  { %v994_v56 = vld [vmem:[#allocation9 + $0x38] sm:$0xff]   ;;  %v995_v57 = vld [vmem:[#allocation9 + $0x30] sm:$0xff]   ;;  %v996_v58 = vld [vmem:[#allocation9 + $0x28] sm:$0xff]  }
  0x45   :  { %905 = vmatpush3.bf16.msra.mxu0 %v964_v15  ;;  %v997_v59 = vld [vmem:[#allocation9 + $0x20] sm:$0xff]   ;;  %v998_v60 = vld [vmem:[#allocation9 + $0x18] sm:$0xff]  }
  0x46   :  { %887 = vmatpush3.bf16.msra.mxu1 %v957_v8  ;;  %906 = vmatprep.subr.bf16.mxu0 %v1134_v1  ;;  %v809_v61 = vld [vmem:[%s1316_s6] ss:$0 sm:$0xff]  ;;  %v999_v8 = vld [vmem:[#allocation9 + $0x10] sm:$0xff]  }
  0x47   :  { %888 = vmatprep.subr.bf16.mxu1 %v1134_v1  ;;  %v444_v15 = vld [vmem:[%s1318_s8] sm:$0x3] }
  0x49   :  { %907 = vmatpush3.bf16.msra.mxu0 %v965_v16 }
  0x4a   :  { %889 = vmatpush3.bf16.msra.mxu1 %v958_v9  ;;  %908 = vmatprep.subr.bf16.mxu0 %v1134_v1  ;;  %v1000_v9 = vld [vmem:[#allocation9 + $0x8] sm:$0xff]  }
  0x4b   :  { %890 = vmatprep.subr.bf16.mxu1 %v1134_v1 }
  0x4d   :  { %909 = vmatpush3.bf16.msra.mxu0 %v966_v17 }
  0x4e   :  { %891 = vmatpush3.bf16.msra.mxu1 %v959_v10  ;;  %910 = vmatprep.subr.bf16.mxu0 %v1134_v1  ;;  %v1001_v10 = vld [vmem:[#allocation9] sm:$0xff]  }
  0x4f   :  { %892 = vmatprep.subr.bf16.mxu1 %v1134_v1 }
  0x51   :  { %911 = vmatpush3.bf16.msra.mxu0 %v967_v26 }
  0x52   :  { %893 = vmatpush3.bf16.msra.mxu1 %v960_v11  ;;  %912 = vmatprep.subr.bf16.mxu0 %v1134_v1  ;;  %v446_v11 = vlaneseq }
  0x53   :  { %894 = vmatprep.subr.bf16.mxu1 %v1134_v1 }
  0x55   :  { %913 = vmatpush3.bf16.msra.mxu0 %v968_v27 }
  0x56   :  { %895 = vmatpush3.bf16.msra.mxu1 %v961_v12  ;;  %914 = vmatprep.subr.bf16.mxu0 %v1134_v1  ;;  %v447_v12 = vshrl.u32 %v446_v11, 7 }
  0x57   :  { %536 = vmatprep.subr.bf16.mxu1 %v972_v30 }
  0x58   :  { %v448_v13 = vsub.s32 0, %v447_v12  ;;  %v452_v14 = vsub.s32 1, %v447_v12 }
  0x59   :  { %915 = vmatpush3.bf16.msra.mxu0 %v969_v28 }
  0x5a   :  { %920 = vmatprep.subr.bf16.mxu0 %v1134_v1  ;;  %v449_v16 = vrot.slane %v444_v15, %v448_v13  ;;  %v453_v17 = vrot.slane %v444_v15, %v452_v14 }
  0xfa   :  { %v879_v19 = vpop.f32.mrf.mxu0 }
  0xfb   :  { %v192_v20 = vadd.f32 %v879_v19, %v797_v18 }
  0xfc   :  { %v186_v21 = vpop.f32.mrf.mxu0 }
  0xfd   :  { %v187_v22 = vadd.f32 %v797_v18, %v186_v21  ;;  %v196_v23 = vmax.f32 %v192_v20, 0.0 }
  0xff   :  { %v195_v24 = vmax.f32 %v187_v22, 0.0 }
 0x101   :  { %v197_v25 = vpack.c.bf16 %v196_v23, %v195_v24 }
 0x103   :  { %897 = vmatmul.mubr.bf16.vlgmr.msra.gmra.mxu1 %v197_v25 }
 0x104   :  { %537 = vmatpush1.bf16.msra.mxu1 %v970_v29  ;;  %568 = vmatprep.mubr.bf16.mxu1 %v1136_v55 }
 0x105   :  { %538 = vmatprep.subr.bf16.mxu1 %v975_v31 }
 0x108   :  { %539 = vmatpush1.bf16.msra.mxu1 %v973_v32 }
 0x109   :  { %540 = vmatprep.subr.bf16.mxu1 %v978_v33  ;;  %v1289_v33 = vand.u32 127, %v446_v11 }
 0x10b   :  { %vm720_vm2 = vcmp.lt.s32.totalorder %v1289_v33, 4  ;;  %vm721_vm5 = vcmp.eq.s32.totalorder %v1289_v33, 4 }
 0x10c   :  { %541 = vmatpush1.bf16.msra.mxu1 %v976_v34  ;;  %v834_v34 = vld [vmem:[%s1320_s10] ss:$0 sm:$0xff]  ;;  %s1137_s10 = smov [#allocation11]  }
 0x10d   :  { %542 = vmatprep.subr.bf16.mxu1 %v981_v35 }
 0x110   :  { %543 = vmatpush1.bf16.msra.mxu1 %v979_v36 }
 0x111   :  { %544 = vmatprep.subr.bf16.mxu1 %v984_v37 }
 0x114   :  { %545 = vmatpush1.bf16.msra.mxu1 %v982_v38 }
 0x115   :  { %546 = vmatprep.subr.bf16.mxu1 %v987_v39 }
 0x118   :  { %547 = vmatpush1.bf16.msra.mxu1 %v985_v40 }
 0x119   :  { %548 = vmatprep.subr.bf16.mxu1 %v990_v51 }
 0x11c   :  { %549 = vmatpush1.bf16.msra.mxu1 %v988_v52 }
 0x11d   :  { %550 = vmatprep.subr.bf16.mxu1 %v993_v53 }
 0x120   :  { %551 = vmatpush1.bf16.msra.mxu1 %v991_v54 }
 0x1c3   :  { %v303_v42 = vpop.f32.mrf.mxu1 }
 0x1c4   :  { %v304_v44 = vadd.f32 %v800_v41, %v303_v42 }
 0x1c5   :  { %v898_v43 = vpop.f32.mrf.mxu1 }
 0x1c6   :  { %v310_v48 = vmax.f32 %v304_v44, 0.0 }
 0x1c7   :  { %v306_v45 = vpop.f32.mrf.mxu1 }
 0x1c8   :  { %v307_v46 = vadd.f32 %v800_v41, %v306_v45  ;;  %v844_v45 = vld [vmem:[#allocation2] ss:$0 sm:$0xff] }
 0x1c9   :  { %v899_v47 = vpop.f32.mrf.mxu1 }
 0x1ca   :  { %v311_v49 = vmax.f32 %v307_v46, 0.0 }
 0x1cc   :  { %v312_v50 = vpack.c.bf16 %v311_v49, %v310_v48 }
 0x1ce   :  { %917 = vmatmul.mubr.bf16.vlgmr.msra.gmra.mxu0 %v312_v50 }
 0x1cf   :  { %936 = vmatprep.mubr.msk.bf16.mxu0 %vm1135_vm1, %v1134_v1  ;;  %921 = vmatpush3.bf16.msra.mxu0 %v994_v56 }
 0x1d0   :  { %922 = vmatprep.subr.bf16.mxu0 %v1134_v1 }
 0x1d3   :  { %923 = vmatpush3.bf16.msra.mxu0 %v995_v57 }
 0x1d4   :  { %924 = vmatprep.subr.bf16.mxu0 %v1134_v1 }
 0x1d7   :  { %925 = vmatpush3.bf16.msra.mxu0 %v996_v58 }
 0x1d8   :  { %926 = vmatprep.subr.bf16.mxu0 %v1134_v1 }
 0x1db   :  { %927 = vmatpush3.bf16.msra.mxu0 %v997_v59 }
 0x1dc   :  { %928 = vmatprep.subr.bf16.mxu0 %v1134_v1 }
 0x1df   :  { %929 = vmatpush3.bf16.msra.mxu0 %v998_v60 }
 0x1e0   :  { %930 = vmatprep.subr.bf16.mxu0 %v1134_v1 }
 0x1e3   :  { %931 = vmatpush3.bf16.msra.mxu0 %v999_v8 }
 0x1e4   :  { %932 = vmatprep.subr.bf16.mxu0 %v1134_v1 }
 0x1e7   :  { %933 = vmatpush3.bf16.msra.mxu0 %v1000_v9 }
 0x1e8   :  { %934 = vmatprep.subr.bf16.mxu0 %v1134_v1  ;;  %v843_v1 = vld [vmem:[%s1321_s11] ss:$0 sm:$0xff]  ;;  %s783_s11 = sshll.u32 %s1137_s10, 4  ;;  %s784_s11 = int_to_ptr.vmem [resolvable:$true] %s783_s11 }
 0x1e9   :  { %s1098_s23 = scalar_lea.vmem %s784_s11, 256  ;;  %p1103_p7 = scmp.lt.s32.totalorder %s784_s11, %s784_s11 }
 0x1ea   :  { %p1099_p6 = scmp.ne.s32.totalorder %s784_s11, %s1098_s23  ;;  %p1104_p8 = scmp.lt.s32.totalorder %s1098_s23, %s1098_s23 }
 0x1eb   :  { %935 = vmatpush3.bf16.msra.mxu0 %v1001_v10 }
 0x1ec   :  { %p1105_p9 = por %p1104_p8, %p1103_p7 }
 0x1ee   :  { %p1106_p10 = pnand %p1105_p9, %p1099_p6 }
 0x28e   :  { %v418_v62 = vpop.f32.mrf.mxu0 }
 0x28f   :  { %v419_v0 = vadd.f32 %v809_v61, %v418_v62 }
 0x290   :  { %v918_v63 = vpop.f32.mrf.mxu0 }
 0x291   :  { %v425_v5 = vmax.f32 %v419_v0, 0.0 }
 0x292   :  { %v421_v2 = vpop.f32.mrf.mxu0 }
 0x293   :  { %v422_v3 = vadd.f32 %v809_v61, %v421_v2 }
 0x294   :  { %v919_v4 = vpop.f32.mrf.mxu0 }
 0x295   :  { %v426_v6 = vmax.f32 %v422_v3, 0.0 }
 0x297   :  { %v427_v7 = vpack.c.bf16 %v426_v6, %v425_v5 }
 0x299   :  { %569 = vmatmul.mubr.bf16.vlgmr.msra.gmra.mxu1 %v427_v7 }
 0x359   :  { %v570_v18 = vpop.f32.mrf.mxu1 }
 0x35a   :  { %v571_v20 = vadd.f32 %v570_v18, %v449_v16 }
 0x35b   :  { %v572_v19 = vpop.f32.mrf.mxu1 }
 0x35c   :  { %v573_v21 = vadd.f32 %v572_v19, %v453_v17  ;;  %v579_v26 = vmax.f32 %v571_v20, 0.0 }
 0x35d   :  { %v574_v22 = vpop.f32.mrf.mxu1 }
 0x35e   :  { %v580_v23 = vmax.f32 %v573_v21, 0.0  ;;  %v575_v24 = vadd.f32 %v574_v22, %v449_v16 }
 0x35f   :  { %v576_v25 = vpop.f32.mrf.mxu1 }
 0x360   :  { %v581_v27 = vmax.f32 %v575_v24, 0.0  ;;  %v577_v28 = vadd.f32 %v576_v25, %v453_v17  ;;  %v703_v29 = vmul.f32 %v843_v1, %v580_v23 }
 0x362   :  { %v583_v30 = vpack.c.bf16 %v581_v27, %v579_v26  ;;  %v582_v31 = vmax.f32 %v577_v28, 0.0  ;;  %705 = vadd.xlane.f32.xlu0 %v703_v29 }
 0x364   :  { %937 = vmatmul.mubr.bf16.vlgmr.msra.gmra.mxu0 %v583_v30  ;;  %v704_v32 = vmul.f32 %v843_v1, %v582_v31 }
 0x366   :  { %707 = vadd.xlane.f32.xlu0 %v704_v32 }
 0x3eb   :  { %v706_v43 = vpop.xlane.xlu0 %705 }
 0x3ec   :  { %v716_v47 = vadd.f32 %v844_v45, %v706_v43 }
 0x3ee   :  { %v744_v49 = vand.u32 2147483647, %v716_v47  ;;  %vm756_vm4 = vcmp.ge.f32.partialorder %v716_v47, 0.0 }
 0x3ef   :  { %v708_v44 = vpop.xlane.xlu0 %707 }
 0x3f0   :  { %v717_v46 = vadd.f32 %v844_v45, %v708_v44  ;;  %v746_v51 = vsub.f32 0.0, %v744_v49 }
 0x3f2   :  { %v745_v48 = vand.u32 2147483647, %v717_v46  ;;  %v748_v53 = vmul.f32 1.442695, %v746_v51  ;;  %vm757_vm3 = vcmp.ge.f32.partialorder %v717_v46, 0.0 }
 0x3f4   :  { %v747_v50 = vsub.f32 0.0, %v745_v48 }
 0x3f6   :  { %v750_v52 = vmul.f32 1.442695, %v747_v50 }
 0x3f8   :  { %1002 = vpow2.f32 %v750_v52 }
 0x3f9   :  { %1004 = vpow2.f32 %v748_v53 }
 0x405   :  { %v1003_v60 = vpop.eup %1002 }
 0x406   :  { %v1005_v61 = vpop.eup %1004  ;;  %v753_v62 = vadd.f32 1.0, %v1003_v60 }
 0x407   :  { %v752_v63 = vadd.f32 1.0, %v1005_v61 }
 0x424   :  { %v689_v35 = vpop.f32.mrf.mxu0 }
 0x425   :  { %v690_v36 = vadd.f32 %v834_v34, %v689_v35 }
 0x426   :  { %v938_v37 = vpop.f32.mrf.mxu0 }
 0x427   :  { %v722_v38 = vsel %vm720_vm2, %v690_v36, -1e+30 }
 0x428   :  { %724 = vmax.xlane.f32.xlu1 %v722_v38  ;;  %v692_v39 = vpop.f32.mrf.mxu0 }
 0x429   :  { %v693_v40 = vadd.f32 %v834_v34, %v692_v39 }
 0x42a   :  { %v939_v41 = vpop.f32.mrf.mxu0 }
 0x42b   :  { %v723_v42 = vsel %vm720_vm2, %v693_v40, -1e+30 }
 0x42c   :  { %726 = vmax.xlane.f32.xlu1 %v723_v42 }
 0x4b1   :  { %v725_v54 = vpop.xlane.xlu1 %724 }
 0x4b2   :  { %v728_v55 = vsub.f32 %v722_v38, %v725_v54 }
 0x4b4   :  { %v730_v56 = vmul.f32 1.442695, %v728_v55 }
 0x4b5   :  { %v727_v57 = vpop.xlane.xlu1 %726 }
 0x4b6   :  { %1006 = vpow2.f32 %v730_v56  ;;  %v729_v58 = vsub.f32 %v723_v42, %v727_v57 }
 0x4b8   :  { %v732_v59 = vmul.f32 1.442695, %v729_v58 }
 0x4ba   :  { %1008 = vpow2.f32 %v732_v59 }
 0x4bb   :  { %1010 = vrcp.f32 %v753_v62 }
 0x4bc   :  { %1012 = vrcp.f32 %v752_v63 }
 0x4c3   :  { %v1007_v0 = vpop.eup %1006 }
 0x4c4   :  { %734 = vadd.xlane.f32.xlu0 %v1007_v0 }
 0x4c7   :  { %v1009_v2 = vpop.eup %1008 }
 0x4c8   :  { %736 = vadd.xlane.f32.xlu1 %v1009_v2  ;;  %v1011_v3 = vpop.eup %1010 }
 0x4c9   :  { %v1013_v4 = vpop.eup %1012  ;;  %v759_v5 = vmul.f32 %v1011_v3, %v1003_v60 }
 0x4ca   :  { %v758_v6 = vmul.f32 %v1013_v4, %v1005_v61 }
 0x4cb   :  { %v761_v7 = vsel %vm757_vm3, %v1011_v3, %v759_v5 }
 0x4cc   :  { %v760_v8 = vsel %vm756_vm4, %v1013_v4, %v758_v6 }
 0x4d9   :  { %769 = vperm.xlu1 %953, %v761_v7  }
 0x4da   :  { %764 = vperm.xlu0 %952, %v760_v8  }
 0x54d   :  { %v735_v9 = vpop.xlane.xlu0 %734 }
 0x54e   :  { %1014 = vrcp.f32 %v735_v9 }
 0x551   :  { %v737_v10 = vpop.xlane.xlu1 %736 }
 0x552   :  { %1016 = vrcp.f32 %v737_v10 }
 0x555   :  { %v765_v11 = vpop.permute.xlu0 %764  ;;  %v770_v16 = vpop.permute.xlu1 %769 }
 0x556   :  { %v772_v14 = vsel %vm721_vm5, %v765_v11, 0.0  ;;  %v773_v19 = vsel %vm721_vm5, %v770_v16, 0.0 }
 0x55b   :  { %v1015_v12 = vpop.eup %1014 }
 0x55c   :  { %v742_v13 = vmul.f32 %v1015_v12, %v1007_v0 }
 0x55e   :  { %v774_v15 = vsel %vm720_vm2, %v742_v13, %v772_v14 }
 0x55f   :  { %v1017_v17 = vpop.eup %1016  ;;  %776 = vst [vmem:[#allocation11] sm:$0xff] %v774_v15 }
 0x560   :  { %v743_v18 = vmul.f32 %v1017_v17, %v1009_v2 }
 0x562   :  { %v775_v20 = vsel %vm720_vm2, %v743_v18, %v773_v19 }
 0x563   :  { %777 = vst [vmem:[#allocation11 + $0x8] sm:$0xff] %v775_v20 }
 0x564   :  { %1109 = shalt.err (!%p1106_p10)
}
 0x565   :  { %789 = dma.vmem_to_hbm [thread:$0]  %s784_s11, 256, %s1323_s13, [#allocation5], %s1131_s5, %s1131_s5, %s1132_s24  }
 0x566   :  { %1124 = dma.done.wait [#allocation5], 256  }
 0x567   :  { %1125 = vsyncadd [#allocation5], 4294967040 }
 0x568   :  { %793 = vsyncpa [#allocation4], 1 }
 0x569   :  { %794 = vsyncpa [#allocation7], 1 }
 0x56a   :  { %795 = vsyncpa [#allocation10], 1 }
 0x56b   :  { %796 = vsyncpa [#allocation5], 1 }

</bundles_post_ra>
